<compile_context>
chip_gen: v7x
topology: tpu7x:2x2x1
jax: 0.10.0
libtpu: 0.0.40
codegen_flags: <defaults>
</compile_context>

<pallas_src>
import functools

import jax
import jax.numpy as jnp
from jax.experimental import pallas as pl
from jax.experimental.pallas import tpu as pltpu

SMOOTH = 1.0            # BinaryDiceLoss(smooth=1); `p=2` is unused in the reference forward.
MAX_GROUP = 8           # max (batch, organ) slices per grid step
OUT_SUB, OUT_LANE = 8, 128   # lane-dense output slab written per grid step


def _dice_group_kernel(b_ref, c_ref, *refs, smooth, group):
    # refs = (pred_0..pred_{G-1}, tgt_0..tgt_{G-1}, out_ref).
    # Each pred_k / tgt_k is the (1, 1, H, W) VMEM tile of one gathered
    # (batch, organ) slice; out_ref is this step's own (1, 8, 128) output block.
    pred_refs = refs[:group]
    tgt_refs = refs[group:2 * group]
    out_ref = refs[2 * group]

    H = pred_refs[0].shape[2]
    col_ids = jax.lax.broadcasted_iota(jnp.int32, (H, group), 1)   # slice-id per lane

    num_all = jnp.zeros((H, group), jnp.float32)   # per-row sum(p*t), one lane per slice
    den_all = jnp.zeros((H, group), jnp.float32)   # per-row sum(p+t)
    val_all = jnp.zeros((H, group), jnp.float32)   # per-row "target[:,0] != -1" mask

    for k in range(group):                                         # unrolled (static)
        x = pred_refs[k][0, 0]                                     # (H, W) logits (bf16)
        t = tgt_refs[k][0, 0]                                      # (H, W) targets
        # sigmoid(x) = 0.5*tanh(0.5*x) + 0.5: one EUP push per vreg, stays in
        # the narrow input dtype on bf16-capable VPUs/EUPs (v6e/v7x).
        p = 0.5 * jnp.tanh(0.5 * x) + 0.5
        t_c = t.astype(p.dtype)
        # f32 only at the reductions; elementwise math stays narrow.
        num_k = jnp.sum((p * t_c).astype(jnp.float32), axis=1, keepdims=True)  # (H, 1)
        # Fused denominator: sum(p + t) == sum(p) + sum(t)  (one reduce, not two).
        den_k = jnp.sum((p + t_c).astype(jnp.float32), axis=1, keepdims=True)  # (H, 1)
        val_k = (t[:, 0:1] != -1).astype(jnp.float32)                          # (H, 1)
        sel = col_ids == k
        num_all = jnp.where(sel, num_k, num_all)
        den_all = jnp.where(sel, den_k, den_all)
        val_all = jnp.where(sel, val_k, val_all)

    # Batched epilogue: ONE (H, group) divide + one masked row reduction per step
    # instead of `group` lane-sparse (H, 1) ones.
    dl = 1.0 - 2.0 * num_all / (den_all + smooth)                  # (H, group)
    masked = jnp.where(val_all != 0.0, dl, 0.0)                    # ignored rows contribute 0
    sum_loss = jnp.sum(masked, axis=0, keepdims=True)              # (1, group)
    n_valid = jnp.sum(val_all, axis=0, keepdims=True)              # (1, group)
    # NOTE: n_valid == 0 yields NaN, matching the PyTorch reference behaviour.
    dice = sum_loss / n_valid                                      # (1, group)

    # Lane-dense (8, 128) output slab: row k broadcasts slice k's dice across
    # all lanes (unmasked full vst); the host wrapper reads lane 0 of rows < group.
    row_ids = jax.lax.broadcasted_iota(jnp.int32, (OUT_SUB, OUT_LANE), 0)
    acc = jnp.zeros((OUT_SUB, OUT_LANE), jnp.float32)
    for k in range(group):
        acc = jnp.where(row_ids == k, dice[0:1, k:k + 1], acc)
    out_ref[0] = acc


def _choose_tiling(n, slice_bytes, vmem_cap):
    """Pick (group, nbuf, vmem_limit) that fit the device VMEM and keep >= 2 grid steps."""
    group = MAX_GROUP
    # Keep the double-buffered gathered working set well inside VMEM (v7x: 64 MiB/TC).
    while group > 1 and group * 2 * slice_bytes > vmem_cap // 2:
        group //= 2
    if vmem_cap <= 64 * 2 ** 20 and slice_bytes > (1 << 20) and group > 4:
        group = 4
    # Megacore load balance: ensure the parallel grid has >= 2 steps whenever n allows.
    while group > 1 and group >= n:
        group //= 2
    grid_len = -(-n // group)

    # Deeper pipelining only for small gathered tiles; never deeper than the grid
    # (buffer_count > number of steps is pure VMEM waste). Floor of 2 keeps the
    # standard double-buffered pipeline.
    nbuf = 3 if slice_bytes <= 256 * 1024 else 2
    nbuf = max(2, min(nbuf, grid_len))
    while nbuf > 2 and group * nbuf * slice_bytes > vmem_cap // 2:
        nbuf -= 1

    # working_set already includes the multi-buffering factor -> no extra 2x.
    working_set = group * nbuf * slice_bytes + 2 * OUT_SUB * OUT_LANE * 4
    vmem_limit = int(min(int(0.75 * vmem_cap),
                         max(24 * 2 ** 20, working_set + (8 << 20))))
    return group, nbuf, vmem_limit


def dice_per_slice(predict, target, b_idx, c_idx, smooth=SMOOTH):
    """Per-(batch, organ) dice losses for the gathered slices; shape (n,)."""
    B, C, H, W = predict.shape
    n = int(b_idx.shape[0])

    slice_bytes = H * W * (predict.dtype.itemsize + target.dtype.itemsize)
    try:
        vmem_cap = int(pltpu.get_tpu_info().vmem_capacity_bytes)
    except Exception:
        vmem_cap = 64 * 2 ** 20        # conservative (v7x-sized) fallback
    group, nbuf, vmem_limit = _choose_tiling(n, slice_bytes, vmem_cap)

    n_groups = -(-n // group)
    n_pad = n_groups * group
    if n_pad != n:
        # Pad with index (0, 0) -> always in bounds; padded rows are dropped below.
        b_idx = jnp.pad(b_idx, (0, n_pad - n))
        c_idx = jnp.pad(c_idx, (0, n_pad - n))

    def _slice_spec(k):
        return pl.BlockSpec(
            (1, 1, H, W),
            lambda i, b, c, kk=k: (b[i * group + kk], c[i * group + kk], 0, 0),
            pipeline_mode=pl.Buffered(nbuf),
        )

    in_specs = ([_slice_spec(k) for k in range(group)]      # pred_0 .. pred_{G-1}
                + [_slice_spec(k) for k in range(group)])    # tgt_0 .. tgt_{G-1}

    grid_spec = pltpu.PrefetchScalarGridSpec(
        num_scalar_prefetch=2,                    # b_idx, c_idx land in SMEM
        grid=(n_groups,),
        in_specs=in_specs,
        # Each step owns its own lane-dense (1, 8, 128) output block -> axis is parallel.
        out_specs=pl.BlockSpec((1, OUT_SUB, OUT_LANE), lambda i, b, c: (i, 0, 0)),
    )

    out = pl.pallas_call(
        functools.partial(_dice_group_kernel, smooth=smooth, group=group),
        out_shape=jax.ShapeDtypeStruct((n_groups, OUT_SUB, OUT_LANE), jnp.float32),
        grid_spec=grid_spec,
        compiler_params=pltpu.CompilerParams(
            dimension_semantics=("parallel",),    # megacore sharding on multi-TC parts
            vmem_limit_bytes=vmem_limit,
        ),
    )(b_idx, c_idx, *([predict] * group), *([target] * group))

    return out[:, :group, 0].reshape(-1)[:n]


def _template_key(name_b):
    # Host-side reproduction of the PyTorch string parsing.
    dataset_index = int(name_b[0:2])
    if dataset_index == 10:
        return name_b[0:2] + "_" + name_b[17:19]
    elif dataset_index == 1:
        return "01_2" if int(name_b[-2:]) >= 60 else "01"
    else:
        return name_b[0:2]


def dice_loss(predict, target, name, TEMPLATE, smooth=SMOOTH,
              pred_dtype=jnp.bfloat16, target_dtype="auto"):
    """Equivalent of DiceLoss.forward(predict, target, name, TEMPLATE).

    predict is fed to the kernel as bf16 by default. target defaults to int8
    when H >= 32 (exact for hard {-1, 0, 1} labels, avoids int8 sublane padding
    on thin slices) and bf16 otherwise; pass target_dtype=None to keep the
    original dtype (e.g. soft labels). In-kernel accumulation is always f32.
    """
    if pred_dtype is not None:
        predict = predict.astype(pred_dtype)
    if target_dtype == "auto":
        target_dtype = jnp.int8 if predict.shape[2] >= 32 else jnp.bfloat16
    if target_dtype is not None:
        target = target.astype(target_dtype)
    # TODO(synk): optional 2-bit packing of {-1,0,1} targets for HBM-bound v5e.

    b_idx, c_idx = [], []
    for b in range(predict.shape[0]):
        key = _template_key(name[b])
        for organ in TEMPLATE[key]:
            b_idx.append(b)
            c_idx.append(organ - 1)
    b_idx = jnp.asarray(b_idx, dtype=jnp.int32)
    c_idx = jnp.asarray(c_idx, dtype=jnp.int32)
    per = dice_per_slice(predict, target, b_idx, c_idx, smooth)
    return jnp.sum(per) / per.shape[0]


def _ref_binary_dice(p, t, smooth):
    # Pure-JAX reference of BinaryDiceLoss.forward on an already-sigmoided slice.
    p = p.reshape(p.shape[0], -1)
    t = t.reshape(t.shape[0], -1)
    num = jnp.sum(p * t, axis=1)
    den = jnp.sum(p, axis=1) + jnp.sum(t, axis=1) + smooth
    dl = 1.0 - 2.0 * num / den
    mask = t[:, 0] != -1
    return jnp.sum(jnp.where(mask, dl, 0.0)) / jnp.sum(mask)


if __name__ == "__main__":
    key = jax.random.PRNGKey(0)
    B, C, H, W = 2, 4, 16, 16
    k1, k2 = jax.random.split(key)

    predict = jax.random.normal(k1, (B, C, H, W), dtype=jnp.float32)   # logits
    target = (jax.random.uniform(k2, (B, C, H, W)) > 0.5).astype(jnp.float32)
    # Mark one row as "ignored" (target[:, 0] == -1 path of BinaryDiceLoss).
    target = target.at[0, 0, 3, :].set(-1.0)

    # Names/TEMPLATE: no weights to load; DiceLoss has no learnable parameters
    # (weight / ignore_index / num_classes are unused in forward).
    name = ["01_case_0001_slice45", "02_case_0002_slice10"]
    TEMPLATE = {"01": [1, 2, 3], "01_2": [1, 2], "02": [2, 4]}

    loss = dice_loss(predict, target, name, TEMPLATE)
    loss = jax.block_until_ready(loss)

    # Pure-JAX reference check on the same bf16-rounded logits the kernel sees
    # (the target cast is exact for {-1, 0, 1}). The kernel uses a tanh-based
    # sigmoid and bf16 elementwise math, so tolerances are relaxed vs f32.
    sp = jax.nn.sigmoid(predict.astype(jnp.bfloat16).astype(jnp.float32))
    ref_losses = []
    for b in range(B):
        for organ in TEMPLATE[_template_key(name[b])]:
            ref_losses.append(
                _ref_binary_dice(sp[b, organ - 1], target[b, organ - 1], SMOOTH))
    ref = jnp.stack(ref_losses).sum() / len(ref_losses)
    assert jnp.allclose(loss, ref, atol=1e-2, rtol=1e-2), (loss, ref)

    print("KERNEL_OK")
</pallas_src>

<mosaic_0001>
module attributes {stable_mosaic.version = 11 : i64} {
  func.func @_dice_group_kernel(%arg0: i32, %arg1: memref<8xi32, #tpu.memory_space<smem>>, %arg2: memref<8xi32, #tpu.memory_space<smem>>, %arg3: memref<1x1x16x16xbf16, #tpu.memory_space<vmem>>, %arg4: memref<1x1x16x16xbf16, #tpu.memory_space<vmem>>, %arg5: memref<1x1x16x16xbf16, #tpu.memory_space<vmem>>, %arg6: memref<1x1x16x16xbf16, #tpu.memory_space<vmem>>, %arg7: memref<1x1x16x16xbf16, #tpu.memory_space<vmem>>, %arg8: memref<1x1x16x16xbf16, #tpu.memory_space<vmem>>, %arg9: memref<1x1x16x16xbf16, #tpu.memory_space<vmem>>, %arg10: memref<1x1x16x16xbf16, #tpu.memory_space<vmem>>, %arg11: memref<1x8x128xf32, #tpu.memory_space<vmem>>) attributes {dimension_semantics = [#tpu.dimension_semantics<parallel>], iteration_bounds = array<i64: 2>, scalar_prefetch = 2 : i64, scratch_operands = 0 : i64, tpu.core_type = #tpu.core_type<tc>, window_params = [{pipeline_mode = #tpu.pipeline_mode<double_buffered>, transform_indices = @transform_0, window_bounds = array<i64: 1, 1, 16, 16>}, {pipeline_mode = #tpu.pipeline_mode<double_buffered>, transform_indices = @transform_1, window_bounds = array<i64: 1, 1, 16, 16>}, {pipeline_mode = #tpu.pipeline_mode<double_buffered>, transform_indices = @transform_2, window_bounds = array<i64: 1, 1, 16, 16>}, {pipeline_mode = #tpu.pipeline_mode<double_buffered>, transform_indices = @transform_3, window_bounds = array<i64: 1, 1, 16, 16>}, {pipeline_mode = #tpu.pipeline_mode<double_buffered>, transform_indices = @transform_4, window_bounds = array<i64: 1, 1, 16, 16>}, {pipeline_mode = #tpu.pipeline_mode<double_buffered>, transform_indices = @transform_5, window_bounds = array<i64: 1, 1, 16, 16>}, {pipeline_mode = #tpu.pipeline_mode<double_buffered>, transform_indices = @transform_6, window_bounds = array<i64: 1, 1, 16, 16>}, {pipeline_mode = #tpu.pipeline_mode<double_buffered>, transform_indices = @transform_7, window_bounds = array<i64: 1, 1, 16, 16>}, {transform_indices = @transform_8, window_bounds = array<i64: 1, 8, 128>}]} {
    %0 = tpu.iota {dimensions = array<i32: 1>} : vector<16x4xi32>
    %cst = arith.constant 0.000000e+00 : f32
    %1 = vector.broadcast %cst : f32 to vector<16x4xf32>
    %cst_0 = arith.constant 0.000000e+00 : f32
    %2 = vector.broadcast %cst_0 : f32 to vector<16x4xf32>
    %cst_1 = arith.constant 0.000000e+00 : f32
    %3 = vector.broadcast %cst_1 : f32 to vector<16x4xf32>
    %c0 = arith.constant 0 : index
    %c0_2 = arith.constant 0 : index
    %c0_3 = arith.constant 0 : index
    %c0_4 = arith.constant 0 : index
    %4 = vector.load %arg3[%c0, %c0_2, %c0_3, %c0_4] : memref<1x1x16x16xbf16, #tpu.memory_space<vmem>>, vector<1x1x16x16xbf16>
    %5 = vector.shape_cast %4 : vector<1x1x16x16xbf16> to vector<16x16xbf16>
    %c0_5 = arith.constant 0 : index
    %c0_6 = arith.constant 0 : index
    %c0_7 = arith.constant 0 : index
    %c0_8 = arith.constant 0 : index
    %6 = vector.load %arg7[%c0_5, %c0_6, %c0_7, %c0_8] : memref<1x1x16x16xbf16, #tpu.memory_space<vmem>>, vector<1x1x16x16xbf16>
    %7 = vector.shape_cast %6 : vector<1x1x16x16xbf16> to vector<16x16xbf16>
    %cst_9 = arith.constant 5.000000e-01 : bf16
    %8 = vector.broadcast %cst_9 : bf16 to vector<16x16xbf16>
    %9 = arith.mulf %8, %5 : vector<16x16xbf16>
    %10 = math.tanh %9 : vector<16x16xbf16>
    %cst_10 = arith.constant 5.000000e-01 : bf16
    %11 = vector.broadcast %cst_10 : bf16 to vector<16x16xbf16>
    %12 = arith.mulf %11, %10 : vector<16x16xbf16>
    %cst_11 = arith.constant 5.000000e-01 : bf16
    %13 = vector.broadcast %cst_11 : bf16 to vector<16x16xbf16>
    %14 = arith.addf %12, %13 : vector<16x16xbf16>
    %15 = arith.mulf %14, %7 : vector<16x16xbf16>
    %16 = arith.extf %15 : vector<16x16xbf16> to vector<16x16xf32>
    %cst_12 = arith.constant dense<0.000000e+00> : vector<16xf32>
    %17 = vector.multi_reduction <add>, %16, %cst_12 [1] : vector<16x16xf32> to vector<16xf32>
    %18 = vector.shape_cast %17 : vector<16xf32> to vector<16x1xf32>
    %19 = arith.addf %14, %7 : vector<16x16xbf16>
    %20 = arith.extf %19 : vector<16x16xbf16> to vector<16x16xf32>
    %cst_13 = arith.constant dense<0.000000e+00> : vector<16xf32>
    %21 = vector.multi_reduction <add>, %20, %cst_13 [1] : vector<16x16xf32> to vector<16xf32>
    %22 = vector.shape_cast %21 : vector<16xf32> to vector<16x1xf32>
    %23 = vector.extract_strided_slice %7 {offsets = [0, 0], sizes = [16, 1], strides = [1, 1]} : vector<16x16xbf16> to vector<16x1xbf16>
    %cst_14 = arith.constant -1.000000e+00 : bf16
    %24 = vector.broadcast %cst_14 : bf16 to vector<16x1xbf16>
    %25 = arith.cmpf one, %23, %24 : vector<16x1xbf16>
    %26 = arith.extui %25 : vector<16x1xi1> to vector<16x1xi32>
    %27 = arith.sitofp %26 : vector<16x1xi32> to vector<16x1xf32>
    %c0_i32 = arith.constant 0 : i32
    %28 = vector.broadcast %c0_i32 : i32 to vector<16x4xi32>
    %29 = arith.cmpi eq, %0, %28 : vector<16x4xi32>
    %30 = vector.shape_cast %18 : vector<16x1xf32> to vector<16x1xf32>
    %31 = vector.broadcast %30 : vector<16x1xf32> to vector<16x4xf32>
    %32 = arith.select %29, %31, %1 : vector<16x4xi1>, vector<16x4xf32>
    %33 = vector.shape_cast %22 : vector<16x1xf32> to vector<16x1xf32>
    %34 = vector.broadcast %33 : vector<16x1xf32> to vector<16x4xf32>
    %35 = arith.select %29, %34, %2 : vector<16x4xi1>, vector<16x4xf32>
    %36 = vector.shape_cast %27 : vector<16x1xf32> to vector<16x1xf32>
    %37 = vector.broadcast %36 : vector<16x1xf32> to vector<16x4xf32>
    %38 = arith.select %29, %37, %3 : vector<16x4xi1>, vector<16x4xf32>
    %c0_15 = arith.constant 0 : index
    %c0_16 = arith.constant 0 : index
    %c0_17 = arith.constant 0 : index
    %c0_18 = arith.constant 0 : index
    %39 = vector.load %arg4[%c0_15, %c0_16, %c0_17, %c0_18] : memref<1x1x16x16xbf16, #tpu.memory_space<vmem>>, vector<1x1x16x16xbf16>
    %40 = vector.shape_cast %39 : vector<1x1x16x16xbf16> to vector<16x16xbf16>
    %c0_19 = arith.constant 0 : index
    %c0_20 = arith.constant 0 : index
    %c0_21 = arith.constant 0 : index
    %c0_22 = arith.constant 0 : index
    %41 = vector.load %arg8[%c0_19, %c0_20, %c0_21, %c0_22] : memref<1x1x16x16xbf16, #tpu.memory_space<vmem>>, vector<1x1x16x16xbf16>
    %42 = vector.shape_cast %41 : vector<1x1x16x16xbf16> to vector<16x16xbf16>
    %cst_23 = arith.constant 5.000000e-01 : bf16
    %43 = vector.broadcast %cst_23 : bf16 to vector<16x16xbf16>
    %44 = arith.mulf %43, %40 : vector<16x16xbf16>
    %45 = math.tanh %44 : vector<16x16xbf16>
    %cst_24 = arith.constant 5.000000e-01 : bf16
    %46 = vector.broadcast %cst_24 : bf16 to vector<16x16xbf16>
    %47 = arith.mulf %46, %45 : vector<16x16xbf16>
    %cst_25 = arith.constant 5.000000e-01 : bf16
    %48 = vector.broadcast %cst_25 : bf16 to vector<16x16xbf16>
    %49 = arith.addf %47, %48 : vector<16x16xbf16>
    %50 = arith.mulf %49, %42 : vector<16x16xbf16>
    %51 = arith.extf %50 : vector<16x16xbf16> to vector<16x16xf32>
    %cst_26 = arith.constant dense<0.000000e+00> : vector<16xf32>
    %52 = vector.multi_reduction <add>, %51, %cst_26 [1] : vector<16x16xf32> to vector<16xf32>
    %53 = vector.shape_cast %52 : vector<16xf32> to vector<16x1xf32>
    %54 = arith.addf %49, %42 : vector<16x16xbf16>
    %55 = arith.extf %54 : vector<16x16xbf16> to vector<16x16xf32>
    %cst_27 = arith.constant dense<0.000000e+00> : vector<16xf32>
    %56 = vector.multi_reduction <add>, %55, %cst_27 [1] : vector<16x16xf32> to vector<16xf32>
    %57 = vector.shape_cast %56 : vector<16xf32> to vector<16x1xf32>
    %58 = vector.extract_strided_slice %42 {offsets = [0, 0], sizes = [16, 1], strides = [1, 1]} : vector<16x16xbf16> to vector<16x1xbf16>
    %cst_28 = arith.constant -1.000000e+00 : bf16
    %59 = vector.broadcast %cst_28 : bf16 to vector<16x1xbf16>
    %60 = arith.cmpf one, %58, %59 : vector<16x1xbf16>
    %61 = arith.extui %60 : vector<16x1xi1> to vector<16x1xi32>
    %62 = arith.sitofp %61 : vector<16x1xi32> to vector<16x1xf32>
    %c1_i32 = arith.constant 1 : i32
    %63 = vector.broadcast %c1_i32 : i32 to vector<16x4xi32>
    %64 = arith.cmpi eq, %0, %63 : vector<16x4xi32>
    %65 = vector.shape_cast %53 : vector<16x1xf32> to vector<16x1xf32>
    %66 = vector.broadcast %65 : vector<16x1xf32> to vector<16x4xf32>
    %67 = arith.select %64, %66, %32 : vector<16x4xi1>, vector<16x4xf32>
    %68 = vector.shape_cast %57 : vector<16x1xf32> to vector<16x1xf32>
    %69 = vector.broadcast %68 : vector<16x1xf32> to vector<16x4xf32>
    %70 = arith.select %64, %69, %35 : vector<16x4xi1>, vector<16x4xf32>
    %71 = vector.shape_cast %62 : vector<16x1xf32> to vector<16x1xf32>
    %72 = vector.broadcast %71 : vector<16x1xf32> to vector<16x4xf32>
    %73 = arith.select %64, %72, %38 : vector<16x4xi1>, vector<16x4xf32>
    %c0_29 = arith.constant 0 : index
    %c0_30 = arith.constant 0 : index
    %c0_31 = arith.constant 0 : index
    %c0_32 = arith.constant 0 : index
    %74 = vector.load %arg5[%c0_29, %c0_30, %c0_31, %c0_32] : memref<1x1x16x16xbf16, #tpu.memory_space<vmem>>, vector<1x1x16x16xbf16>
    %75 = vector.shape_cast %74 : vector<1x1x16x16xbf16> to vector<16x16xbf16>
    %c0_33 = arith.constant 0 : index
    %c0_34 = arith.constant 0 : index
    %c0_35 = arith.constant 0 : index
    %c0_36 = arith.constant 0 : index
    %76 = vector.load %arg9[%c0_33, %c0_34, %c0_35, %c0_36] : memref<1x1x16x16xbf16, #tpu.memory_space<vmem>>, vector<1x1x16x16xbf16>
    %77 = vector.shape_cast %76 : vector<1x1x16x16xbf16> to vector<16x16xbf16>
    %cst_37 = arith.constant 5.000000e-01 : bf16
    %78 = vector.broadcast %cst_37 : bf16 to vector<16x16xbf16>
    %79 = arith.mulf %78, %75 : vector<16x16xbf16>
    %80 = math.tanh %79 : vector<16x16xbf16>
    %cst_38 = arith.constant 5.000000e-01 : bf16
    %81 = vector.broadcast %cst_38 : bf16 to vector<16x16xbf16>
    %82 = arith.mulf %81, %80 : vector<16x16xbf16>
    %cst_39 = arith.constant 5.000000e-01 : bf16
    %83 = vector.broadcast %cst_39 : bf16 to vector<16x16xbf16>
    %84 = arith.addf %82, %83 : vector<16x16xbf16>
    %85 = arith.mulf %84, %77 : vector<16x16xbf16>
    %86 = arith.extf %85 : vector<16x16xbf16> to vector<16x16xf32>
    %cst_40 = arith.constant dense<0.000000e+00> : vector<16xf32>
    %87 = vector.multi_reduction <add>, %86, %cst_40 [1] : vector<16x16xf32> to vector<16xf32>
    %88 = vector.shape_cast %87 : vector<16xf32> to vector<16x1xf32>
    %89 = arith.addf %84, %77 : vector<16x16xbf16>
    %90 = arith.extf %89 : vector<16x16xbf16> to vector<16x16xf32>
    %cst_41 = arith.constant dense<0.000000e+00> : vector<16xf32>
    %91 = vector.multi_reduction <add>, %90, %cst_41 [1] : vector<16x16xf32> to vector<16xf32>
    %92 = vector.shape_cast %91 : vector<16xf32> to vector<16x1xf32>
    %93 = vector.extract_strided_slice %77 {offsets = [0, 0], sizes = [16, 1], strides = [1, 1]} : vector<16x16xbf16> to vector<16x1xbf16>
    %cst_42 = arith.constant -1.000000e+00 : bf16
    %94 = vector.broadcast %cst_42 : bf16 to vector<16x1xbf16>
    %95 = arith.cmpf one, %93, %94 : vector<16x1xbf16>
    %96 = arith.extui %95 : vector<16x1xi1> to vector<16x1xi32>
    %97 = arith.sitofp %96 : vector<16x1xi32> to vector<16x1xf32>
    %c2_i32 = arith.constant 2 : i32
    %98 = vector.broadcast %c2_i32 : i32 to vector<16x4xi32>
    %99 = arith.cmpi eq, %0, %98 : vector<16x4xi32>
    %100 = vector.shape_cast %88 : vector<16x1xf32> to vector<16x1xf32>
    %101 = vector.broadcast %100 : vector<16x1xf32> to vector<16x4xf32>
    %102 = arith.select %99, %101, %67 : vector<16x4xi1>, vector<16x4xf32>
    %103 = vector.shape_cast %92 : vector<16x1xf32> to vector<16x1xf32>
    %104 = vector.broadcast %103 : vector<16x1xf32> to vector<16x4xf32>
    %105 = arith.select %99, %104, %70 : vector<16x4xi1>, vector<16x4xf32>
    %106 = vector.shape_cast %97 : vector<16x1xf32> to vector<16x1xf32>
    %107 = vector.broadcast %106 : vector<16x1xf32> to vector<16x4xf32>
    %108 = arith.select %99, %107, %73 : vector<16x4xi1>, vector<16x4xf32>
    %c0_43 = arith.constant 0 : index
    %c0_44 = arith.constant 0 : index
    %c0_45 = arith.constant 0 : index
    %c0_46 = arith.constant 0 : index
    %109 = vector.load %arg6[%c0_43, %c0_44, %c0_45, %c0_46] : memref<1x1x16x16xbf16, #tpu.memory_space<vmem>>, vector<1x1x16x16xbf16>
    %110 = vector.shape_cast %109 : vector<1x1x16x16xbf16> to vector<16x16xbf16>
    %c0_47 = arith.constant 0 : index
    %c0_48 = arith.constant 0 : index
    %c0_49 = arith.constant 0 : index
    %c0_50 = arith.constant 0 : index
    %111 = vector.load %arg10[%c0_47, %c0_48, %c0_49, %c0_50] : memref<1x1x16x16xbf16, #tpu.memory_space<vmem>>, vector<1x1x16x16xbf16>
    %112 = vector.shape_cast %111 : vector<1x1x16x16xbf16> to vector<16x16xbf16>
    %cst_51 = arith.constant 5.000000e-01 : bf16
    %113 = vector.broadcast %cst_51 : bf16 to vector<16x16xbf16>
    %114 = arith.mulf %113, %110 : vector<16x16xbf16>
    %115 = math.tanh %114 : vector<16x16xbf16>
    %cst_52 = arith.constant 5.000000e-01 : bf16
    %116 = vector.broadcast %cst_52 : bf16 to vector<16x16xbf16>
    %117 = arith.mulf %116, %115 : vector<16x16xbf16>
    %cst_53 = arith.constant 5.000000e-01 : bf16
    %118 = vector.broadcast %cst_53 : bf16 to vector<16x16xbf16>
    %119 = arith.addf %117, %118 : vector<16x16xbf16>
    %120 = arith.mulf %119, %112 : vector<16x16xbf16>
    %121 = arith.extf %120 : vector<16x16xbf16> to vector<16x16xf32>
    %cst_54 = arith.constant dense<0.000000e+00> : vector<16xf32>
    %122 = vector.multi_reduction <add>, %121, %cst_54 [1] : vector<16x16xf32> to vector<16xf32>
    %123 = vector.shape_cast %122 : vector<16xf32> to vector<16x1xf32>
    %124 = arith.addf %119, %112 : vector<16x16xbf16>
    %125 = arith.extf %124 : vector<16x16xbf16> to vector<16x16xf32>
    %cst_55 = arith.constant dense<0.000000e+00> : vector<16xf32>
    %126 = vector.multi_reduction <add>, %125, %cst_55 [1] : vector<16x16xf32> to vector<16xf32>
    %127 = vector.shape_cast %126 : vector<16xf32> to vector<16x1xf32>
    %128 = vector.extract_strided_slice %112 {offsets = [0, 0], sizes = [16, 1], strides = [1, 1]} : vector<16x16xbf16> to vector<16x1xbf16>
    %cst_56 = arith.constant -1.000000e+00 : bf16
    %129 = vector.broadcast %cst_56 : bf16 to vector<16x1xbf16>
    %130 = arith.cmpf one, %128, %129 : vector<16x1xbf16>
    %131 = arith.extui %130 : vector<16x1xi1> to vector<16x1xi32>
    %132 = arith.sitofp %131 : vector<16x1xi32> to vector<16x1xf32>
    %c3_i32 = arith.constant 3 : i32
    %133 = vector.broadcast %c3_i32 : i32 to vector<16x4xi32>
    %134 = arith.cmpi eq, %0, %133 : vector<16x4xi32>
    %135 = vector.shape_cast %123 : vector<16x1xf32> to vector<16x1xf32>
    %136 = vector.broadcast %135 : vector<16x1xf32> to vector<16x4xf32>
    %137 = arith.select %134, %136, %102 : vector<16x4xi1>, vector<16x4xf32>
    %138 = vector.shape_cast %127 : vector<16x1xf32> to vector<16x1xf32>
    %139 = vector.broadcast %138 : vector<16x1xf32> to vector<16x4xf32>
    %140 = arith.select %134, %139, %105 : vector<16x4xi1>, vector<16x4xf32>
    %141 = vector.shape_cast %132 : vector<16x1xf32> to vector<16x1xf32>
    %142 = vector.broadcast %141 : vector<16x1xf32> to vector<16x4xf32>
    %143 = arith.select %134, %142, %108 : vector<16x4xi1>, vector<16x4xf32>
    %cst_57 = arith.constant 2.000000e+00 : f32
    %144 = vector.broadcast %cst_57 : f32 to vector<16x4xf32>
    %145 = arith.mulf %144, %137 : vector<16x4xf32>
    %cst_58 = arith.constant 1.000000e+00 : f32
    %146 = vector.broadcast %cst_58 : f32 to vector<16x4xf32>
    %147 = arith.addf %140, %146 : vector<16x4xf32>
    %148 = arith.divf %145, %147 : vector<16x4xf32>
    %cst_59 = arith.constant 1.000000e+00 : f32
    %149 = vector.broadcast %cst_59 : f32 to vector<16x4xf32>
    %150 = arith.subf %149, %148 : vector<16x4xf32>
    %cst_60 = arith.constant 0.000000e+00 : f32
    %151 = vector.broadcast %cst_60 : f32 to vector<16x4xf32>
    %152 = arith.cmpf one, %143, %151 : vector<16x4xf32>
    %cst_61 = arith.constant 0.000000e+00 : f32
    %153 = vector.broadcast %cst_61 : f32 to vector<16x4xf32>
    %154 = arith.select %152, %150, %153 : vector<16x4xi1>, vector<16x4xf32>
    %cst_62 = arith.constant dense<0.000000e+00> : vector<4xf32>
    %155 = vector.multi_reduction <add>, %154, %cst_62 [0] : vector<16x4xf32> to vector<4xf32>
    %156 = vector.shape_cast %155 : vector<4xf32> to vector<1x4xf32>
    %cst_63 = arith.constant dense<0.000000e+00> : vector<4xf32>
    %157 = vector.multi_reduction <add>, %143, %cst_63 [0] : vector<16x4xf32> to vector<4xf32>
    %158 = vector.shape_cast %157 : vector<4xf32> to vector<1x4xf32>
    %159 = arith.divf %156, %158 : vector<1x4xf32>
    %160 = tpu.iota {dimensions = array<i32: 0>} : vector<8x128xi32>
    %cst_64 = arith.constant 0.000000e+00 : f32
    %161 = vector.broadcast %cst_64 : f32 to vector<8x128xf32>
    %c0_i32_65 = arith.constant 0 : i32
    %162 = vector.broadcast %c0_i32_65 : i32 to vector<8x128xi32>
    %163 = arith.cmpi eq, %160, %162 : vector<8x128xi32>
    %164 = vector.extract_strided_slice %159 {offsets = [0, 0], sizes = [1, 1], strides = [1, 1]} : vector<1x4xf32> to vector<1x1xf32>
    %165 = vector.shape_cast %164 : vector<1x1xf32> to vector<1x1xf32>
    %166 = vector.broadcast %165 : vector<1x1xf32> to vector<8x128xf32>
    %167 = arith.select %163, %166, %161 : vector<8x128xi1>, vector<8x128xf32>
    %c1_i32_66 = arith.constant 1 : i32
    %168 = vector.broadcast %c1_i32_66 : i32 to vector<8x128xi32>
    %169 = arith.cmpi eq, %160, %168 : vector<8x128xi32>
    %170 = vector.extract_strided_slice %159 {offsets = [0, 1], sizes = [1, 1], strides = [1, 1]} : vector<1x4xf32> to vector<1x1xf32>
    %171 = vector.shape_cast %170 : vector<1x1xf32> to vector<1x1xf32>
    %172 = vector.broadcast %171 : vector<1x1xf32> to vector<8x128xf32>
    %173 = arith.select %169, %172, %167 : vector<8x128xi1>, vector<8x128xf32>
    %c2_i32_67 = arith.constant 2 : i32
    %174 = vector.broadcast %c2_i32_67 : i32 to vector<8x128xi32>
    %175 = arith.cmpi eq, %160, %174 : vector<8x128xi32>
    %176 = vector.extract_strided_slice %159 {offsets = [0, 2], sizes = [1, 1], strides = [1, 1]} : vector<1x4xf32> to vector<1x1xf32>
    %177 = vector.shape_cast %176 : vector<1x1xf32> to vector<1x1xf32>
    %178 = vector.broadcast %177 : vector<1x1xf32> to vector<8x128xf32>
    %179 = arith.select %175, %178, %173 : vector<8x128xi1>, vector<8x128xf32>
    %c3_i32_68 = arith.constant 3 : i32
    %180 = vector.broadcast %c3_i32_68 : i32 to vector<8x128xi32>
    %181 = arith.cmpi eq, %160, %180 : vector<8x128xi32>
    %182 = vector.extract_strided_slice %159 {offsets = [0, 3], sizes = [1, 1], strides = [1, 1]} : vector<1x4xf32> to vector<1x1xf32>
    %183 = vector.shape_cast %182 : vector<1x1xf32> to vector<1x1xf32>
    %184 = vector.broadcast %183 : vector<1x1xf32> to vector<8x128xf32>
    %185 = arith.select %181, %184, %179 : vector<8x128xi1>, vector<8x128xf32>
    %c0_69 = arith.constant 0 : index
    %c0_70 = arith.constant 0 : index
    %c0_71 = arith.constant 0 : index
    %186 = vector.load %arg11[%c0_69, %c0_70, %c0_71] : memref<1x8x128xf32, #tpu.memory_space<vmem>>, vector<1x8x128xf32>
    %187 = vector.shape_cast %186 : vector<1x8x128xf32> to vector<8x128xf32>
    %188 = vector.shape_cast %185 : vector<8x128xf32> to vector<1x8x128xf32>
    tpu.vector_store %arg11[%c0_69, %c0_70, %c0_71], %188 {strides = array<i32>} : memref<1x8x128xf32, #tpu.memory_space<vmem>>, vector<1x8x128xf32>,
    return
  }
  func.func @transform_0(%arg0: i32, %arg1: memref<8xi32, #tpu.memory_space<smem>>, %arg2: memref<8xi32, #tpu.memory_space<smem>>) -> (i32, i32, i32, i32) {
    %c4_i32 = arith.constant 4 : i32
    %0 = arith.muli %arg0, %c4_i32 : i32
    %c0_i32 = arith.constant 0 : i32
    %1 = arith.addi %0, %c0_i32 : i32
    %2 = arith.index_cast %1 : i32 to index
    %3 = memref.load %arg1[%2] : memref<8xi32, #tpu.memory_space<smem>>
    %c4_i32_0 = arith.constant 4 : i32
    %4 = arith.muli %arg0, %c4_i32_0 : i32
    %c0_i32_1 = arith.constant 0 : i32
    %5 = arith.addi %4, %c0_i32_1 : i32
    %6 = arith.index_cast %5 : i32 to index
    %7 = memref.load %arg2[%6] : memref<8xi32, #tpu.memory_space<smem>>
    %c0_i32_2 = arith.constant 0 : i32
    %c0_i32_3 = arith.constant 0 : i32
    %c0_i32_4 = arith.constant 0 : i32
    return %3, %7, %c0_i32_2, %c0_i32_3 : i32, i32, i32, i32
  }
  func.func @transform_1(%arg0: i32, %arg1: memref<8xi32, #tpu.memory_space<smem>>, %arg2: memref<8xi32, #tpu.memory_space<smem>>) -> (i32, i32, i32, i32) {
    %c4_i32 = arith.constant 4 : i32
    %0 = arith.muli %arg0, %c4_i32 : i32
    %c1_i32 = arith.constant 1 : i32
    %1 = arith.addi %0, %c1_i32 : i32
    %2 = arith.index_cast %1 : i32 to index
    %3 = memref.load %arg1[%2] : memref<8xi32, #tpu.memory_space<smem>>
    %c4_i32_0 = arith.constant 4 : i32
    %4 = arith.muli %arg0, %c4_i32_0 : i32
    %c1_i32_1 = arith.constant 1 : i32
    %5 = arith.addi %4, %c1_i32_1 : i32
    %6 = arith.index_cast %5 : i32 to index
    %7 = memref.load %arg2[%6] : memref<8xi32, #tpu.memory_space<smem>>
    %c0_i32 = arith.constant 0 : i32
    %c0_i32_2 = arith.constant 0 : i32
    %c0_i32_3 = arith.constant 0 : i32
    return %3, %7, %c0_i32, %c0_i32_2 : i32, i32, i32, i32
  }
  func.func @transform_2(%arg0: i32, %arg1: memref<8xi32, #tpu.memory_space<smem>>, %arg2: memref<8xi32, #tpu.memory_space<smem>>) -> (i32, i32, i32, i32) {
    %c4_i32 = arith.constant 4 : i32
    %0 = arith.muli %arg0, %c4_i32 : i32
    %c2_i32 = arith.constant 2 : i32
    %1 = arith.addi %0, %c2_i32 : i32
    %2 = arith.index_cast %1 : i32 to index
    %3 = memref.load %arg1[%2] : memref<8xi32, #tpu.memory_space<smem>>
    %c4_i32_0 = arith.constant 4 : i32
    %4 = arith.muli %arg0, %c4_i32_0 : i32
    %c2_i32_1 = arith.constant 2 : i32
    %5 = arith.addi %4, %c2_i32_1 : i32
    %6 = arith.index_cast %5 : i32 to index
    %7 = memref.load %arg2[%6] : memref<8xi32, #tpu.memory_space<smem>>
    %c0_i32 = arith.constant 0 : i32
    %c0_i32_2 = arith.constant 0 : i32
    %c0_i32_3 = arith.constant 0 : i32
    return %3, %7, %c0_i32, %c0_i32_2 : i32, i32, i32, i32
  }
  func.func @transform_3(%arg0: i32, %arg1: memref<8xi32, #tpu.memory_space<smem>>, %arg2: memref<8xi32, #tpu.memory_space<smem>>) -> (i32, i32, i32, i32) {
    %c4_i32 = arith.constant 4 : i32
    %0 = arith.muli %arg0, %c4_i32 : i32
    %c3_i32 = arith.constant 3 : i32
    %1 = arith.addi %0, %c3_i32 : i32
    %2 = arith.index_cast %1 : i32 to index
    %3 = memref.load %arg1[%2] : memref<8xi32, #tpu.memory_space<smem>>
    %c4_i32_0 = arith.constant 4 : i32
    %4 = arith.muli %arg0, %c4_i32_0 : i32
    %c3_i32_1 = arith.constant 3 : i32
    %5 = arith.addi %4, %c3_i32_1 : i32
    %6 = arith.index_cast %5 : i32 to index
    %7 = memref.load %arg2[%6] : memref<8xi32, #tpu.memory_space<smem>>
    %c0_i32 = arith.constant 0 : i32
    %c0_i32_2 = arith.constant 0 : i32
    %c0_i32_3 = arith.constant 0 : i32
    return %3, %7, %c0_i32, %c0_i32_2 : i32, i32, i32, i32
  }
  func.func @transform_4(%arg0: i32, %arg1: memref<8xi32, #tpu.memory_space<smem>>, %arg2: memref<8xi32, #tpu.memory_space<smem>>) -> (i32, i32, i32, i32) {
    %c4_i32 = arith.constant 4 : i32
    %0 = arith.muli %arg0, %c4_i32 : i32
    %c0_i32 = arith.constant 0 : i32
    %1 = arith.addi %0, %c0_i32 : i32
    %2 = arith.index_cast %1 : i32 to index
    %3 = memref.load %arg1[%2] : memref<8xi32, #tpu.memory_space<smem>>
    %c4_i32_0 = arith.constant 4 : i32
    %4 = arith.muli %arg0, %c4_i32_0 : i32
    %c0_i32_1 = arith.constant 0 : i32
    %5 = arith.addi %4, %c0_i32_1 : i32
    %6 = arith.index_cast %5 : i32 to index
    %7 = memref.load %arg2[%6] : memref<8xi32, #tpu.memory_space<smem>>
    %c0_i32_2 = arith.constant 0 : i32
    %c0_i32_3 = arith.constant 0 : i32
    %c0_i32_4 = arith.constant 0 : i32
    return %3, %7, %c0_i32_2, %c0_i32_3 : i32, i32, i32, i32
  }
  func.func @transform_5(%arg0: i32, %arg1: memref<8xi32, #tpu.memory_space<smem>>, %arg2: memref<8xi32, #tpu.memory_space<smem>>) -> (i32, i32, i32, i32) {
    %c4_i32 = arith.constant 4 : i32
    %0 = arith.muli %arg0, %c4_i32 : i32
    %c1_i32 = arith.constant 1 : i32
    %1 = arith.addi %0, %c1_i32 : i32
    %2 = arith.index_cast %1 : i32 to index
    %3 = memref.load %arg1[%2] : memref<8xi32, #tpu.memory_space<smem>>
    %c4_i32_0 = arith.constant 4 : i32
    %4 = arith.muli %arg0, %c4_i32_0 : i32
    %c1_i32_1 = arith.constant 1 : i32
    %5 = arith.addi %4, %c1_i32_1 : i32
    %6 = arith.index_cast %5 : i32 to index
    %7 = memref.load %arg2[%6] : memref<8xi32, #tpu.memory_space<smem>>
    %c0_i32 = arith.constant 0 : i32
    %c0_i32_2 = arith.constant 0 : i32
    %c0_i32_3 = arith.constant 0 : i32
    return %3, %7, %c0_i32, %c0_i32_2 : i32, i32, i32, i32
  }
  func.func @transform_6(%arg0: i32, %arg1: memref<8xi32, #tpu.memory_space<smem>>, %arg2: memref<8xi32, #tpu.memory_space<smem>>) -> (i32, i32, i32, i32) {
    %c4_i32 = arith.constant 4 : i32
    %0 = arith.muli %arg0, %c4_i32 : i32
    %c2_i32 = arith.constant 2 : i32
    %1 = arith.addi %0, %c2_i32 : i32
    %2 = arith.index_cast %1 : i32 to index
    %3 = memref.load %arg1[%2] : memref<8xi32, #tpu.memory_space<smem>>
    %c4_i32_0 = arith.constant 4 : i32
    %4 = arith.muli %arg0, %c4_i32_0 : i32
    %c2_i32_1 = arith.constant 2 : i32
    %5 = arith.addi %4, %c2_i32_1 : i32
    %6 = arith.index_cast %5 : i32 to index
    %7 = memref.load %arg2[%6] : memref<8xi32, #tpu.memory_space<smem>>
    %c0_i32 = arith.constant 0 : i32
    %c0_i32_2 = arith.constant 0 : i32
    %c0_i32_3 = arith.constant 0 : i32
    return %3, %7, %c0_i32, %c0_i32_2 : i32, i32, i32, i32
  }
  func.func @transform_7(%arg0: i32, %arg1: memref<8xi32, #tpu.memory_space<smem>>, %arg2: memref<8xi32, #tpu.memory_space<smem>>) -> (i32, i32, i32, i32) {
    %c4_i32 = arith.constant 4 : i32
    %0 = arith.muli %arg0, %c4_i32 : i32
    %c3_i32 = arith.constant 3 : i32
    %1 = arith.addi %0, %c3_i32 : i32
    %2 = arith.index_cast %1 : i32 to index
    %3 = memref.load %arg1[%2] : memref<8xi32, #tpu.memory_space<smem>>
    %c4_i32_0 = arith.constant 4 : i32
    %4 = arith.muli %arg0, %c4_i32_0 : i32
    %c3_i32_1 = arith.constant 3 : i32
    %5 = arith.addi %4, %c3_i32_1 : i32
    %6 = arith.index_cast %5 : i32 to index
    %7 = memref.load %arg2[%6] : memref<8xi32, #tpu.memory_space<smem>>
    %c0_i32 = arith.constant 0 : i32
    %c0_i32_2 = arith.constant 0 : i32
    %c0_i32_3 = arith.constant 0 : i32
    return %3, %7, %c0_i32, %c0_i32_2 : i32, i32, i32, i32
  }
  func.func @transform_8(%arg0: i32, %arg1: memref<8xi32, #tpu.memory_space<smem>>, %arg2: memref<8xi32, #tpu.memory_space<smem>>) -> (i32, i32, i32) {
    %c0_i32 = arith.constant 0 : i32
    %c0_i32_0 = arith.constant 0 : i32
    %c0_i32_1 = arith.constant 0 : i32
    return %arg0, %c0_i32, %c0_i32_0 : i32, i32, i32
  }
}

</mosaic_0001>

<bundles_post_ra>
// kernel: tpu_custom_call.1
= control target key start
LH: loop header
LB: loop body
LE: loop exit
PB: predicated region body
PF: predicated region fallthrough
CT: control target
= control target key end

     0   :  { %s3512_s0 = inlined_call_operand.hbm [shape: s32[8], index: 0, kind: input, shape index: {}]   ;;  %s3513_s2 = inlined_call_operand.hbm [shape: bf16[2,4,16,16], index: 2, kind: input, shape index: {}]   ;;  %s3514_s3 = inlined_call_operand.hbm [shape: bf16[2,4,16,16], index: 3, kind: input, shape index: {}]   ;;  %s3515_s4 = inlined_call_operand.hbm [shape: bf16[2,4,16,16], index: 4, kind: input, shape index: {}]   ;;  %s3516_s5 = inlined_call_operand.hbm [shape: bf16[2,4,16,16], index: 5, kind: input, shape index: {}]   ;;  %s3517_s6 = inlined_call_operand.hbm [shape: bf16[2,4,16,16], index: 6, kind: input, shape index: {}]   ;;  %s3518_s7 = inlined_call_operand.hbm [shape: bf16[2,4,16,16], index: 7, kind: input, shape index: {}]   ;;  %s3519_s8 = inlined_call_operand.hbm [shape: bf16[2,4,16,16], index: 8, kind: input, shape index: {}]   ;;  %s3520_s9 = inlined_call_operand.hbm [shape: bf16[2,4,16,16], index: 9, kind: input, shape index: {}]   ;;  %s3521_s10 = inlined_call_operand.hbm [shape: f32[2,8,128], index: 10, kind: output, shape index: {}]   ;;  %s3522_s1 = inlined_call_operand.vmem [shape: s32[8], index: 1, kind: input, shape index: {}]  }
   0x1   :  { %3626 = sst [smem:[#allocation94_spill]] %s3513_s2  ;;  %s1764_s15 = scalar_lea.hbm %s3512_s0, 16 }
   0x2   :  { %3627 = sst [smem:[#allocation95_spill]] %s3514_s3  ;;  %p1765_p0 = scmp.ne.s32.totalorder %s3512_s0, %s1764_s15 }
   0x3   :  { %3628 = sst [smem:[#allocation96_spill]] %s3515_s4  ;;  %p1768_p1 = scmp.lt.u32.totalorder %s1764_s15, %s3512_s0 }
   0x4   :  { %3629 = sst [smem:[#allocation97_spill]] %s3516_s5 }
   0x5   :  { %3630 = sst [smem:[#allocation98_spill]] %s3517_s6  ;;  %p1770_p2 = pnand %p1768_p1, %p1765_p0 }
   0x6   :  { %3631 = sst [smem:[#allocation99_spill]] %s3518_s7 }
   0x7   :  { %3632 = sst [smem:[#allocation100_spill]] %s3519_s8 }
   0x8   :  { %3633 = sst [smem:[#allocation101_spill]] %s3520_s9 }
   0x9   :  { %3634 = sst [smem:[#allocation102_spill]] %s3521_s10 }
   0xa   :  { %1773 = shalt.err (!%p1770_p2)  }
   0xb   :  { %s2300_s20 = smov [#allocation3]   ;;  %s17_s25 = sshll.u32 %s3522_s1, 4  ;;  %s18_s25 = int_to_ptr.vmem [resolvable:$true] %s17_s25 }
   0xc   :  { %16 = dma.hbm_to_smem %s3512_s0, 16, %s2300_s20, [#allocation2] }
   0xd   :  { %s1774_s26 = scalar_lea.vmem %s18_s25, 16  ;;  %p1779_p4 = scmp.lt.s32.totalorder %s18_s25, %s18_s25 }
   0xe   :  { %p1775_p3 = scmp.ne.s32.totalorder %s18_s25, %s1774_s26  ;;  %p1780_p5 = scmp.lt.s32.totalorder %s1774_s26, %s1774_s26 }
  0x10   :  { %p1781_p6 = por %p1780_p5, %p1779_p4 }
  0x12   :  { %p1782_p7 = pnand %p1781_p6, %p1775_p3 }
  0x14   :  { %1785 = shalt.err (!%p1782_p7)  }
  0x15   :  { %s2301_s27 = smov [#allocation4]  }
  0x16   :  { %20 = dma.vmem_to_smem %s18_s25, 16, %s2301_s27, [#allocation2] }
  0x17   :  { %2150 = dma.done.wait [#allocation2], 32 }
  0x18   :  { %2151 = vsyncadd [#allocation2], 4294967264 }
  0x19   :  { %22 = sfence }
  0x1a   :  { %23 = vsyncpa [#allocation6], 0 }
  0x1b   :  { %25 = vsyncpa [#allocation6 + $0x1], 0 }
  0x1c   :  { %26 = vsyncpa [#allocation9], 0 }
  0x1d   :  { %28 = vsyncpa [#allocation9 + $0x1], 0 }
  0x1e   :  { %29 = vsyncpa [#allocation12], 0 }
  0x1f   :  { %31 = vsyncpa [#allocation12 + $0x1], 0 }
  0x20   :  { %32 = vsyncpa [#allocation15], 0 }
  0x21   :  { %34 = vsyncpa [#allocation15 + $0x1], 0 }
  0x22   :  { %35 = vsyncpa [#allocation18], 0 }
  0x23   :  { %37 = vsyncpa [#allocation18 + $0x1], 0 }
  0x24   :  { %38 = vsyncpa [#allocation7], 0 }
  0x25   :  { %40 = vsyncpa [#allocation7 + $0x1], 0  ;;  %s2388_s0 = smov 0   ;;  %s2390_s1 = smov 0  }
  0x26   :  { %3635 = sst [smem:[#allocation46_spill]] %s2390_s1  ;;  %s2392_s28 = smov 0  }
  0x27   :  { %s2394_s29 = smov 0   ;;  %s2396_s30 = smov 0  }
  0x28   :  { %s2398_s11 = smov 0   ;;  %s2400_s12 = smov 0  }
  0x29   :  { %s2402_s13 = smov 0   ;;  %s2404_s14 = smov 0  }
  0x2a   :  { %s2406_s15 = smov 0   ;;  %s2408_s16 = smov 0  }
  0x2b   :  { %3636 = sst [smem:[#allocation47_spill]] %s2406_s15  ;;  %s2410_s17 = smov 0  }
  0x2c   :  { %s2412_s18 = smov 0   ;;  %s2414_s19 = smov 0  }
  0x2d   :  { %s2416_s20 = smov 0   ;;  %s2418_s21 = smov 0  }
  0x2e   :  { %s2420_s22 = smov 0   ;;  %s2422_s23 = smov 0  }
  0x2f   :  { %s2424_s24 = smov 0   ;;  %s2426_s25 = smov 0  }
  0x30   :  { %s2428_s26 = smov 0   ;;  %s2430_s27 = smov 0  }
  0x31   :  { %s2432_s10 = smov 0   ;;  %s2434_s9 = smov 0  }
  0x32   :  { %3637 = sst [smem:[#allocation48_spill]] %s2432_s10  ;;  %s2436_s8 = smov 0  }
  0x33   :  { %3638 = sst [smem:[#allocation49_spill]] %s2434_s9  ;;  %s2438_s6 = smov 0  }
  0x34   :  { %s2440_s4 = smov 0   ;;  %s2442_s2 = smov 0  }
  0x35 LB: > { %s3643_s1 = sld [smem:[#allocation46_spill]]  ;;  %s3644_s15 = sld [smem:[#allocation47_spill]]  ;;  %s2298_s2 = sphi %s2442_s2, %s3819_s2   ;;  %s2294_s4 = sphi %s2440_s4, %s3858_s4   ;;  %s2290_s6 = sphi %s2438_s6, %s3857_s6   ;;  %s2286_s8 = sphi %s2436_s8, %s3856_s8   ;;  %s2274_s27 = sphi %s2430_s27, %s3843_s27   ;;  %s2270_s26 = sphi %s2428_s26, %s3842_s26   ;;  %s2266_s25 = sphi %s2426_s25, %s3841_s25   ;;  %s2262_s24 = sphi %s2424_s24, %s3839_s24   ;;  %s2258_s23 = sphi %s2422_s23, %s3838_s23   ;;  %s2254_s22 = sphi %s2420_s22, %s3836_s22   ;;  %s2250_s21 = sphi %s2418_s21, %s3835_s21   ;;  %s2246_s20 = sphi %s2416_s20, %s3853_s20   ;;  %s2242_s19 = sphi %s2414_s19, %s3833_s19   ;;  %s2238_s18 = sphi %s2412_s18, %s3851_s18   ;;  %s2234_s17 = sphi %s2410_s17, %s3831_s17   ;;  %s2230_s16 = sphi %s2408_s16, %s3849_s16   ;;  %s2222_s14 = sphi %s2404_s14, %s3828_s14   ;;  %s2218_s13 = sphi %s2402_s13, %s3827_s13   ;;  %s2214_s12 = sphi %s2400_s12, %s3826_s12   ;;  %s2210_s11 = sphi %s2398_s11, %s3825_s11   ;;  %s2206_s30 = sphi %s2396_s30, %s3824_s30   ;;  %s2202_s29 = sphi %s2394_s29, %s3840_s29   ;;  %s2198_s28 = sphi %s2392_s28, %s3822_s28   ;;  %s2190_s0 = sphi %s2388_s0, %s3820_s0  }
  0x36   : > { %3645 = sst [smem:[#allocation46_spill]] %s2190_s0  ;;  %s3652_s10 = sld [smem:[#allocation48_spill]] }
  0x37   : > { %3647 = sst [smem:[#allocation50_spill]] %s2198_s28  ;;  %s3654_s9 = sld [smem:[#allocation49_spill]] }
  0x38   : > { %3648 = sst [smem:[#allocation51_spill]] %s2202_s29  ;;  %s2527_s7 = sadd.s32 4294967295, %s2298_s2  }
  0x39   : > { %3649 = sst [smem:[#allocation52_spill]] %s2206_s30  ;;  %s2531_s3 = sadd.s32 1, %s2298_s2  }
  0x3a   : > { %3650 = sst [smem:[#allocation53_spill]] %s2210_s11  ;;  %s2534_s0 = sshll.u32 %s2298_s2, 2 }
  0x3b   : > { %3646 = sst [smem:[#allocation47_spill]] %s3643_s1  ;;  %s2539_s29 = sadd.s32 4, %s2534_s0 }
  0x3c   : > { %3651 = sst [smem:[#allocation54_spill]] %s2214_s12  ;;  %s61_s30 = sadd.s32 1, %s2294_s4 }
  0x3d   : > { %3653 = sst [smem:[#allocation48_spill]] %s2218_s13  ;;  %p68_p8 = scmp.ne.s32.totalorder %s2294_s4, %s2290_s6 }
  0x3e   : > { %3655 = sst [smem:[#allocation49_spill]] %s2222_s14  ;;  %p3578_p9 = scmp.eq.s32.totalorder %s2298_s2, 0 }
  0x3f   : > { %3656 = sst [smem:[#allocation55_spill]] %s3644_s15  ;;  %p74_p10 = scmp.ne.s32.totalorder %s2290_s6, %s2286_s8 }
  0x40   : > { %3657 = sst [smem:[#allocation56_spill]] %s2230_s16  ;;  %p3573_p11 = scmp.eq.s32.totalorder %s2527_s7, 0 }
  0x41   : > { %3658 = sst [smem:[#allocation57_spill]] %s2234_s17  ;;  %p2551_p12 = por %p3578_p9, %p68_p8 }
  0x42   : > { %3659 = sst [smem:[#allocation58_spill]] %s2238_s18  ;;  %p2560_p13 = por %p3573_p11, %p74_p10 }
  0x43   : > { %3660 = sst [smem:[#allocation59_spill]] %s2242_s19  ;;  %s2567_s14 = sadd.s32 1, %s2539_s29 }
  0x44   : > { %3661 = sst [smem:[#allocation60_spill]] %s2246_s20  ;;  %s97_s19 = sadd.s32 1, %s3654_s9 }
  0x45   : > { %3662 = sst [smem:[#allocation61_spill]] %s2254_s22  ;;  %p104_p1 = scmp.ne.s32.totalorder %s3654_s9, %s3652_s10 }
  0x46   : > { %3663 = sst [smem:[#allocation62_spill]] %s2258_s23  ;;  %p110_p3 = scmp.ne.s32.totalorder %s3652_s10, %s2274_s27 }
  0x47   : > { %3664 = sst [smem:[#allocation63_spill]] %s2266_s25  ;;  %p2579_p2 = por %p104_p1, %p3578_p9 }
  0x48   : > { %3665 = sst [smem:[#allocation64_spill]] %s2270_s26  ;;  %p2593_p4 = por %p110_p3, %p3573_p11 }
  0x49   : > { %3666 = sst [smem:[#allocation65_spill]] %s3652_s10  ;;  %s133_s10 = sadd.s32 1, %s2270_s26 }
  0x4a   : > { %3667 = sst [smem:[#allocation66_spill]] %s3654_s9  ;;  %p140_p6 = scmp.ne.s32.totalorder %s2270_s26, %s2266_s25 }
  0x4b   : > { %3668 = sst [smem:[#allocation67_spill]] %s2290_s6  ;;  %p146_p7 = scmp.ne.s32.totalorder %s2266_s25, %s2262_s24 }
  0x4c   : > { %3669 = sst [smem:[#allocation68_spill]] %s2294_s4  ;;  %p2617_p8 = por %p140_p6, %p3578_p9 }
  0x4d   : > { %3670 = sst [smem:[#allocation69_spill]] %s2298_s2  ;;  %p2623_p10 = por %p146_p7, %p3573_p11 }
  0x4e   : > { %3671 = sst [smem:[#allocation70_spill]] %s2527_s7  ;;  %p176_p1 = scmp.ne.s32.totalorder %s2258_s23, %s2254_s22 }
  0x4f   : > { %3672 = sst [smem:[#allocation71_spill]] %s2531_s3  ;;  %s2556_s3 = sadd.s32 1, %s2534_s0 }
  0x50   : > { %s51_s1 = sld [smem:[#allocation3 + %s2534_s0]]  ;;  %p2639_p3 = por %p176_p1, %p3578_p9 }
  0x51   : > { %s52_s28 = sld [smem:[#allocation4 + %s2534_s0]] }
  0x52   : > { %s54_s11 = sld [smem:[#allocation3 + %s2539_s29]] }
  0x53   : > { %s55_s12 = sld [smem:[#allocation4 + %s2539_s29]] }
  0x54   : > { %s3673_s5 = scalar_select %p2551_p12, 1, 0 }
  0x55   : > { %s3675_s13 = scalar_select %p2560_p13, 1, 0 }
  0x56   : > { %3674 = sst [smem:[#allocation72_spill]] %s3673_s5  ;;  %s3689_s25 = sld [smem:[#allocation60_spill]] }
  0x57   : > { %3676 = sst [smem:[#allocation73_spill]] %s3675_s13 }
  0x58   : > { %s86_s8 = sld [smem:[#allocation3 + %s2556_s3]]  ;;  %s56_s5 = ssub.s32 %s51_s1, %s54_s11 }
  0x59   : > { %s87_s6 = sld [smem:[#allocation4 + %s2556_s3]]  ;;  %s57_s15 = ssub.s32 %s52_s28, %s55_s12 }
  0x5a   : > { %s58_s16 = sor.u32 %s57_s15, %s56_s5  ;;  %s90_s17 = sld [smem:[#allocation3 + %s2567_s14]] }
  0x5b   : > { %p59_p0 = scmp.eq.s32.totalorder %s58_s16, 0  ;;  %s91_s18 = sld [smem:[#allocation4 + %s2567_s14]] }
  0x5c   : > { %s3678_s13 = scalar_select %p2579_p2, 1, 0 }
  0x5d   : > { %s2575_s20 = scalar_select %p59_p0, %s2294_s4, %s61_s30  }
  0x5e   : > { %3679 = sst [smem:[#allocation75_spill]] %s3678_s13  ;;  %s2586_s5 = sadd.s32 2, %s2534_s0 }
  0x5f   : > { %3677 = sst [smem:[#allocation74_spill]] %s2575_s20  ;;  %s2589_s1 = sadd.s32 2, %s2539_s29 }
  0x60   : > { %3680 = sst [smem:[#allocation76_spill]] %s2586_s5  ;;  %s92_s28 = ssub.s32 %s86_s8, %s90_s17 }
  0x61   : > { %s3681_s30 = scalar_select %p2593_p4, 1, 0 }
  0x62   : > { %s93_s11 = ssub.s32 %s87_s6, %s91_s18  ;;  %s122_s12 = sld [smem:[#allocation3 + %s2586_s5]] }
  0x63   : > { %3682 = sst [smem:[#allocation77_spill]] %s3681_s30  ;;  %s94_s15 = sor.u32 %s93_s11, %s92_s28 }
  0x64   : > { %s123_s16 = sld [smem:[#allocation4 + %s2586_s5]]  ;;  %p95_p5 = scmp.eq.s32.totalorder %s94_s15, 0 }
  0x65   : > { %s126_s27 = sld [smem:[#allocation3 + %s2589_s1]]  ;;  %s2610_s17 = sadd.s32 3, %s2534_s0 }
  0x66   : > { %s127_s20 = sld [smem:[#allocation4 + %s2589_s1]]  ;;  %s2613_s6 = sadd.s32 3, %s2539_s29 }
  0x67   : > { %s2603_s4 = scalar_select %p95_p5, %s3654_s9, %s97_s19  }
  0x68   : > { %3684 = sst [smem:[#allocation79_spill]] %s2610_s17  ;;  %s3690_s13 = sld [smem:[#allocation59_spill]] }
  0x69   : > { %3683 = sst [smem:[#allocation78_spill]] %s2603_s4  ;;  %s3691_s9 = sld [smem:[#allocation58_spill]] }
  0x6a   : > { %s3685_s18 = scalar_select %p2617_p8, 1, 0 }
  0x6b   : > { %s3687_s19 = scalar_select %p2623_p10, 1, 0 }
  0x6c   : > { %3686 = sst [smem:[#allocation80_spill]] %s3685_s18  ;;  %s128_s24 = ssub.s32 %s122_s12, %s126_s27 }
  0x6d   : > { %3688 = sst [smem:[#allocation81_spill]] %s3687_s19  ;;  %s129_s28 = ssub.s32 %s123_s16, %s127_s20 }
  0x6e   : > { %s158_s8 = sld [smem:[#allocation3 + %s2610_s17]]  ;;  %s130_s15 = sor.u32 %s129_s28, %s128_s24 }
  0x6f   : > { %s159_s11 = sld [smem:[#allocation4 + %s2610_s17]]  ;;  %p131_p0 = scmp.eq.s32.totalorder %s130_s15, 0 }
  0x70   : > { %s162_s4 = sld [smem:[#allocation3 + %s2613_s6]]  ;;  %s169_s18 = sadd.s32 1, %s2258_s23 }
  0x71   : > { %s163_s30 = sld [smem:[#allocation4 + %s2613_s6]]  ;;  %p182_p5 = scmp.ne.s32.totalorder %s2254_s22, %s2250_s21 }
  0x72   : > { %s2635_s19 = scalar_select %p131_p0, %s2270_s26, %s133_s10  }
  0x73   : > { %s3693_s20 = scalar_select %p2639_p3, 1, 0 }
  0x74   : > { %3692 = sst [smem:[#allocation82_spill]] %s2635_s19  ;;  %p2649_p6 = por %p182_p5, %p3573_p11 }
  0x75   : > { %3694 = sst [smem:[#allocation58_spill]] %s3693_s20  ;;  %s3698_s20 = sld [smem:[#allocation56_spill]] }
  0x76   : > { %s193_s12 = sld [smem:[#allocation3 + %s2534_s0]]  ;;  %s164_s27 = ssub.s32 %s158_s8, %s162_s4 }
  0x77   : > { %s194_s16 = sld [smem:[#allocation4 + %s2534_s0]]  ;;  %s165_s10 = ssub.s32 %s159_s11, %s163_s30 }
  0x78   : > { %s3695_s24 = scalar_select %p2649_p6, 1, 0 }
  0x79   : > { %s196_s28 = sld [smem:[#allocation3 + %s2539_s29]]  ;;  %s166_s15 = sor.u32 %s165_s10, %s164_s27 }
  0x7a   : > { %3696 = sst [smem:[#allocation83_spill]] %s3695_s24  ;;  %s3697_s26 = sld [smem:[#allocation57_spill]] }
  0x7b   : > { %s197_s19 = sld [smem:[#allocation4 + %s2539_s29]]  ;;  %p167_p7 = scmp.eq.s32.totalorder %s166_s15, 0 }
  0x7c   : > { %s203_s21 = sadd.s32 1, %s3689_s25  ;;  %p210_p0 = scmp.ne.s32.totalorder %s3689_s25, %s3690_s13 }
  0x7d   : > { %p216_p1 = scmp.ne.s32.totalorder %s3690_s13, %s3691_s9  ;;  %s3699_s4 = sld [smem:[#allocation55_spill]] }
  0x7e   : > { %s2661_s8 = scalar_select %p167_p7, %s2258_s23, %s169_s18  }
  0x7f   : > { %p2665_p5 = por %p210_p0, %p3578_p9  ;;  %p2671_p6 = por %p216_p1, %p3573_p11 }
  0x80   : > { %3700 = sst [smem:[#allocation84_spill]] %s2661_s8  ;;  %s198_s11 = ssub.s32 %s193_s12, %s196_s28 }
  0x81   : > { %s3701_s30 = scalar_select %p2665_p5, 1, 0 }
  0x82   : > { %s3703_s29 = scalar_select %p2671_p6, 1, 0 }
  0x83   : > { %3702 = sst [smem:[#allocation55_spill]] %s3701_s30  ;;  %s199_s9 = ssub.s32 %s194_s16, %s197_s19 }
  0x84   : > { %3704 = sst [smem:[#allocation85_spill]] %s3703_s29  ;;  %s200_s18 = sor.u32 %s199_s9, %s198_s11 }
  0x85   : > { %s228_s27 = sld [smem:[#allocation3 + %s2556_s3]]  ;;  %p201_p7 = scmp.eq.s32.totalorder %s200_s18, 0 }
  0x86   : > { %s229_s13 = sld [smem:[#allocation4 + %s2556_s3]]  ;;  %s239_s22 = sadd.s32 1, %s3697_s26 }
  0x87   : > { %s232_s10 = sld [smem:[#allocation3 + %s2567_s14]]  ;;  %p246_p0 = scmp.ne.s32.totalorder %s3697_s26, %s3698_s20 }
  0x88   : > { %s3705_s15 = sld [smem:[#allocation49_spill]]  ;;  %s3706_s24 = sld [smem:[#allocation48_spill]] }
  0x89   : > { %s233_s8 = sld [smem:[#allocation4 + %s2567_s14]]  ;;  %s3860_s25 = smov (!%p201_p7, %s3689_s25), %s203_s21 }
  0x8a   : > { %s3707_s30 = sld [smem:[#allocation54_spill]]  ;;  %3708 = sst [smem:[#allocation86_spill]] %s3860_s25 }
  0x8b   : > { %p2687_p1 = por %p246_p0, %p3578_p9  ;;  %p252_p11 = scmp.ne.s32.totalorder %s3698_s20, %s3699_s4 }
  0x8c   : > { %s264_s12 = sld [smem:[#allocation3 + %s2586_s5]]  ;;  %p3710_p6 = scmp.eq.s32.totalorder %s2527_s7, 0 }
  0x8d   : > { %s3709_s19 = scalar_select %p2687_p1, 1, 0 }
  0x8e   : > { %s265_s14 = sld [smem:[#allocation4 + %s2586_s5]]  ;;  %s234_s16 = ssub.s32 %s228_s27, %s232_s10 }
  0x8f   : > { %p2697_p10 = por %p252_p11, %p3710_p6  ;;  %s235_s21 = ssub.s32 %s229_s13, %s233_s8 }
  0x90   : > { %s268_s11 = sld [smem:[#allocation3 + %s2589_s1]]  ;;  %s236_s9 = sor.u32 %s235_s21, %s234_s16 }
  0x91   : > { %s3711_s28 = scalar_select %p2697_p10, 1, 0 }
  0x92   : > { %s269_s18 = sld [smem:[#allocation4 + %s2589_s1]]  ;;  %p237_p7 = scmp.eq.s32.totalorder %s236_s9, 0 }
  0x93   : > { %3712 = sst [smem:[#allocation54_spill]] %s3711_s28  ;;  %s3714_s29 = sld [smem:[#allocation52_spill]] }
  0x94   : > { %s3713_s25 = sld [smem:[#allocation53_spill]]  ;;  %s275_s20 = sadd.s32 1, %s3705_s15 }
  0x95   : > { %p282_p0 = scmp.ne.s32.totalorder %s3705_s15, %s3706_s24  ;;  %p288_p9 = scmp.ne.s32.totalorder %s3706_s24, %s3707_s30 }
  0x96   : > { %s3715_s4 = sld [smem:[#allocation51_spill]]  ;;  %s3862_s26 = smov (!%p237_p7, %s3697_s26), %s239_s22 }
  0x97   : > { %3716 = sst [smem:[#allocation87_spill]] %s3862_s26  ;;  %p3717_p11 = scmp.eq.s32.totalorder %s2298_s2, 0 }
  0x98   : > { %s3718_s8 = sld [smem:[#allocation71_spill]]  ;;  %p3720_p10 = scmp.eq.s32.totalorder %s2527_s7, 0 }
  0x99   : > { %p2713_p6 = por %p282_p0, %p3717_p11  ;;  %s3721_s1 = sld [smem:[#allocation50_spill]] }
  0x9a   : > { %p2719_p4 = por %p288_p9, %p3720_p10  ;;  %s270_s10 = ssub.s32 %s264_s12, %s268_s11 }
  0x9b   : > { %s3719_s27 = scalar_select %p2713_p6, 1, 0 }
  0x9c   : > { %s3722_s13 = scalar_select %p2719_p4, 1, 0 }
  0x9d   : > { %s300_s24 = sld [smem:[#allocation3 + %s2610_s17]]  ;;  %s271_s30 = ssub.s32 %s265_s14, %s269_s18 }
  0x9e   : > { %3723 = sst [smem:[#allocation51_spill]] %s3722_s13  ;;  %s272_s22 = sor.u32 %s271_s30, %s270_s10 }
  0x9f   : > { %s301_s16 = sld [smem:[#allocation4 + %s2610_s17]]  ;;  %p273_p7 = scmp.eq.s32.totalorder %s272_s22, 0 }
  0xa0   : > { %s3724_s21 = sld [smem:[#allocation47_spill]]  ;;  %s311_s28 = sadd.s32 1, %s3713_s25 }
  0xa1   : > { %s304_s9 = sld [smem:[#allocation3 + %s2613_s6]]  ;;  %p318_p0 = scmp.ne.s32.totalorder %s3713_s25, %s3714_s29 }
  0xa2   : > { %s305_s26 = sld [smem:[#allocation4 + %s2613_s6]]  ;;  %s3864_s15 = smov (!%p273_p7, %s3705_s15), %s275_s20 }
  0xa3   : > { %3725 = sst [smem:[#allocation88_spill]] %s3864_s15  ;;  %p3726_p9 = pmov %p3717_p11 }
  0xa4   : > { %s3727_s13 = sld [smem:[#allocation46_spill]]  ;;  %p324_p11 = scmp.ne.s32.totalorder %s3714_s29, %s3715_s4 }
  0xa5   : > { %p2735_p10 = por %p318_p0, %p3726_p9  ;;  %s334_s14 = ssub.s32 %s2298_s2, %s3718_s8 }
  0xa6   : > { %s337_s11 = sadd.s32 1, %s3721_s1  ;;  %p3729_p4 = scmp.eq.s32.totalorder %s2527_s7, 0 }
  0xa7   : > { %s3728_s12 = scalar_select %p2735_p10, 1, 0 }
  0xa8   : > { %s306_s18 = ssub.s32 %s300_s24, %s304_s9  ;;  %p2746_p13 = por %p324_p11, %p3729_p4 }
  0xa9   : > { %s307_s10 = ssub.s32 %s301_s16, %s305_s26  ;;  %p335_p7 = scmp.eq.s32.totalorder %s334_s14, 0 }
  0xaa   : > { %s3730_s6 = scalar_select %p2746_p13, 1, 0 }
  0xab   : > { %s308_s20 = sor.u32 %s307_s10, %s306_s18  ;;  %p347_p6 = scmp.ne.s32.totalorder %s3721_s1, %s3724_s21 }
  0xac   : > { %3731 = sst [smem:[#allocation89_spill]] %s3730_s6  ;;  %p309_p5 = scmp.eq.s32.totalorder %s308_s20, 0 }
  0xad   : > { %p348_p8 = scmp.eq.s32.totalorder %s2527_s7, 1  ;;  %s3866_s1 = smov (!%p335_p7, %s3721_s1), %s337_s11 }
  0xae   : > { %3732 = sst [smem:[#allocation90_spill]] %s3866_s1  ;;  %s3868_s25 = smov (!%p309_p5, %s3713_s25), %s311_s28 }
  0xaf   : > { %3733 = sst [smem:[#allocation91_spill]] %s3868_s25  ;;  %p2759_p0 = por %p348_p8, %p347_p6 }
  0xb0   : > { %p353_p9 = scmp.ne.s32.totalorder %s3724_s21, %s3727_s13  ;;  %s3736_s4 = sadd.s32 4294967294, %s2298_s2  }
  0xb1   : > { %s3734_s29 = scalar_select %p2759_p0, 1, 0 }
  0xb2   : > { %p354_p4 = scmp.eq.s32.totalorder %s3736_s4, 1  ;;  %p3602_p13 = scmp.ge.s32.totalorder %s2298_s2, 2 }
  0xb3   : > { %3735 = sst [smem:[#allocation92_spill]] %s3734_s29  ;;  %s3739_s26 = sld [smem:[#allocation66_spill]] (!%p3602_p13) }
  0xb4   : > { %p2767_p11 = por %p354_p4, %p353_p9  ;;  %370 = sbr.rel (%p3602_p13) target bundleno = 473 (0x1d9), region = 16 }
  0xb5   : > { %s3742_s30 = sld [smem:[#allocation57_spill]] (!%p3602_p13)  ;;  %s2783_s14 = sand.u32 (!%p3602_p13), 1, %s2298_s2  }
  0xb6   : > { %s3737_s8 = scalar_select %p2767_p11, 1, 0 }
  0xb7   : > { %s456_s4 = sand.u32 (!%p3602_p13), 1, %s2258_s23   ;;  %s3743_s2 = sld [smem:[#allocation95_spill]] (!%p3602_p13) }
  0xb8   : > { %3738 = sst [smem:[#allocation93_spill]] %s3737_s8  ;;  %s2790_s15 = sshll.u32 (!%p3602_p13), %s456_s4, 3 }
  0xb9   : > { %s402_s13 = sand.u32 (!%p3602_p13), 1, %s3739_s26  }
  0xba   : > { %s1355_s16 = sshll.u32 (!%p3602_p13), %s402_s13, 3 }
  0xbb   : > { %s1433_s22 = scalar_select %p2579_p2, [#allocation3], [#allocation22] }
  0xbc   : > { %s1434_s21 = scalar_select %p2579_p2, %s2556_s3, 0 }
  0xbd   : > { %s1435_s9 = scalar_select %p2579_p2, [#allocation4], [#allocation23] }
  0xbe   : > { %s407_s11 = sld [smem:[%s1433_s22 + %s1434_s21]]  ;;  %s404_s10 = scalar_lea.vmem [#allocation8], %s1355_s16 }
  0xbf   : > { %s408_s18 = sld [smem:[%s1435_s9 + %s1434_s21]]  ;;  %s417_s20 = sshll.u32 %s404_s10, 4  ;;  %s2786_s20 = int_to_ptr.vmem [resolvable:$true] %s417_s20 }
  0xc0   : > { %s1443_s26 = scalar_select %p2639_p3, [#allocation3], [#allocation26] }
  0xc1   : > { %s509_s1 = sand.u32 1, %s3742_s30   ;;  %s3744_s5 = smov %s3743_s2 }
  0xc2   : > { %s2798_s16 = sshll.u32 %s509_s1, 3  ;;  %s3607_s21 = scalar_lea.sflag [#allocation9], %s2783_s14 }
  0xc4   : > { %s1358_s13 = sshll.u32 %s407_s11, 3 }
  0xc5   : > { %s1357_s25 = sshll.u32 %s408_s18, 1 }
  0xc6   : > { %s414_s8 = sadd.s32 %s1358_s13, %s1357_s25 }
  0xc7   : > { %s1359_s29 = sshll.u32 %s414_s8, 6  ;;  %s1790_s8 = scalar_lea.hbm %s3744_s5, 1024 }
  0xc8   : > { %s2796_s22 = scalar_lea.hbm %s3743_s2, %s1359_s29 }
  0xc9   : > { %s1786_s9 = scalar_lea.hbm %s2796_s22, 128  ;;  %p1791_p7 = scmp.lt.u32.totalorder %s2796_s22, %s3744_s5 }
  0xca   : > { %p1787_p8 = scmp.ne.s32.totalorder %s2796_s22, %s1786_s9  ;;  %p1792_p9 = scmp.lt.u32.totalorder %s1790_s8, %s1786_s9 }
  0xcb   : > { %p1794_p13 = scmp.lt.u32.totalorder %s1786_s9, %s2796_s22 }
  0xcc   : > { %p1788_p5 = pnand %p1787_p8, %p2579_p2  ;;  %p1793_p4 = por %p1792_p9, %p1791_p7 }
  0xce   : > { %p1789_p6 = pneg %p1788_p5  ;;  %p1795_p11 = por %p1794_p13, %p1793_p4 }
  0xd0   : > { %p1796_p0 = pnand %p1795_p11, %p1789_p6 }
  0xd2   : > { %1799 = shalt.err (!%p1796_p0)
}
  0xd3   : > { %s1800_s2 = scalar_lea.vmem %s2786_s20, 128  ;;  %s2302_s1 = smov [#allocation8]  }
  0xd4   : > { %p1801_p8 = scmp.ne.s32.totalorder %s2786_s20, %s1800_s2  ;;  %s1804_s6 = sshll.u32 %s2302_s1, 4  ;;  %s1805_s6 = int_to_ptr.vmem [resolvable:$false] %s1804_s6 }
  0xd5   : > { %s1806_s29 = scalar_lea.vmem %s1805_s6, 256  ;;  %p1807_p12 = scmp.lt.s32.totalorder %s2786_s20, %s1805_s6 }
  0xd6   : > { %p1802_p5 = pnand %p1801_p8, %p2579_p2  ;;  %p1808_p1 = scmp.lt.s32.totalorder %s1806_s29, %s1800_s2 }
  0xd8   : > { %p1803_p10 = pneg %p1802_p5  ;;  %p1809_p7 = por %p1808_p1, %p1807_p12 }
  0xda   : > { %p1810_p9 = pnand %p1809_p7, %p1803_p10 }
  0xdc   : > { %1813 = shalt.err (!%p1810_p9)
}
  0xdd   : > { %s3610_s18 = smov 64   ;;  %s3608_s10 = smov 4  }
  0xde   : > { %1437 = dma.hbm_to_vmem [thread:$0]  (%p2579_p2), %s2796_s22, 128, %s2786_s20, %s3607_s21, %s3610_s18, %s3610_s18, %s3608_s10  }
  0xdf   : > { %s3745_s4 = sld [smem:[#allocation68_spill]]  ;;  %s458_s25 = scalar_lea.vmem [#allocation11], %s2790_s15 }
  0xe0   : > { %s1444_s13 = scalar_select %p2639_p3, %s2610_s17, 0 }
  0xe1   : > { %s1445_s9 = scalar_select %p2639_p3, [#allocation4], [#allocation27] }
  0xe2   : > { %s461_s30 = sld [smem:[%s1443_s26 + %s1444_s13]]  ;;  %s471_s8 = sshll.u32 %s458_s25, 4  ;;  %s2849_s8 = int_to_ptr.vmem [resolvable:$true] %s471_s8 }
  0xe3   : > { %s462_s11 = sld [smem:[%s1445_s9 + %s1444_s13]]  ;;  %p3746_p12 = scmp.ne.s32.totalorder %s3709_s19, 0 }
  0xe4   : > { %s511_s22 = scalar_lea.vmem [#allocation14], %s2798_s16  ;;  %s3747_s21 = sld [smem:[#allocation97_spill]] }
  0xe5   : > { %s1453_s7 = scalar_select %p3746_p12, [#allocation3], [#allocation30] }
  0xe6   : > { %s3870_s3 = smov (!%p3746_p12, %s2556_s3), 0  ;;  %s524_s2 = sshll.u32 %s511_s22, 4  ;;  %s2851_s2 = int_to_ptr.vmem [resolvable:$true] %s524_s2 }
  0xe7   : > { %s1455_s24 = scalar_select %p3746_p12, [#allocation4], [#allocation31] }
  0xe8   : > { %s2843_s20 = sld [smem:[%s1453_s7 + %s3870_s3]]  ;;  %s1368_s1 = sshll.u32 %s461_s30, 3 }
  0xe9   : > { %s2846_s6 = sld [smem:[%s1455_s24 + %s3870_s3]]  ;;  %s1367_s26 = sshll.u32 %s462_s11, 1 }
  0xea   : > { %s3612_s15 = sand.u32 1, %s3745_s4   ;;  %s468_s29 = sadd.s32 %s1368_s1, %s1367_s26 }
  0xeb   : > { %s1369_s13 = sshll.u32 %s468_s29, 6  ;;  %s3748_s10 = smov %s3747_s21 }
  0xec   : > { %s2856_s18 = scalar_lea.hbm %s3747_s21, %s1369_s13  ;;  %s2860_s3 = sshll.u32 %s3612_s15, 3 }
  0xed   : > { %s3614_s16 = scalar_lea.sflag [#allocation12], %s2783_s14  ;;  %s1814_s30 = scalar_lea.hbm %s2856_s18, 128 }
  0xee   : > { %p1815_p13 = scmp.ne.s32.totalorder %s2856_s18, %s1814_s30  ;;  %s1818_s24 = scalar_lea.hbm %s3748_s10, 1024 }
  0xef   : > { %p1819_p10 = scmp.lt.u32.totalorder %s2856_s18, %s3748_s10  ;;  %p1820_p0 = scmp.lt.u32.totalorder %s1818_s24, %s1814_s30 }
  0xf0   : > { %p1816_p2 = pnand %p1815_p13, %p2639_p3  ;;  %p1822_p6 = scmp.lt.u32.totalorder %s1814_s30, %s2856_s18 }
  0xf1   : > { %p1821_p11 = por %p1820_p0, %p1819_p10 }
  0xf2   : > { %p1817_p1 = pneg %p1816_p2 }
  0xf3   : > { %p1823_p4 = por %p1822_p6, %p1821_p11 }
  0xf5   : > { %p1824_p8 = pnand %p1823_p4, %p1817_p1 }
  0xf7   : > { %1827 = shalt.err (!%p1824_p8)
}
  0xf8   : > { %s1828_s1 = scalar_lea.vmem %s2849_s8, 128  ;;  %s2305_s26 = smov [#allocation11]  }
  0xf9   : > { %p1829_p5 = scmp.ne.s32.totalorder %s2849_s8, %s1828_s1  ;;  %s1832_s29 = sshll.u32 %s2305_s26, 4  ;;  %s1833_s29 = int_to_ptr.vmem [resolvable:$false] %s1832_s29 }
  0xfa   : > { %s1834_s13 = scalar_lea.vmem %s1833_s29, 256  ;;  %p1835_p13 = scmp.lt.s32.totalorder %s2849_s8, %s1833_s29 }
  0xfb   : > { %p1830_p7 = pnand %p1829_p5, %p2639_p3  ;;  %p1836_p2 = scmp.lt.s32.totalorder %s1834_s13, %s1828_s1 }
  0xfd   : > { %p1831_p9 = pneg %p1830_p7  ;;  %p1837_p10 = por %p1836_p2, %p1835_p13 }
  0xff   : > { %p1838_p0 = pnand %p1837_p10, %p1831_p9 }
 0x101   : > { %1841 = shalt.err (!%p1838_p0)
}
 0x102   : > { %s3749_s9 = smov 4   ;;  %s3750_s25 = smov 64  }
 0x103   : > { %s3751_s30 = sld [smem:[#allocation64_spill]]  ;;  %s1377_s11 = sshll.u32 %s2846_s6, 1 }
 0x104   : > { %1447 = dma.hbm_to_vmem [thread:$0]  (%p2639_p3), %s2856_s18, 128, %s2849_s8, %s3614_s16, %s3750_s25, %s3750_s25, %s3749_s9  }
 0x105   : > { %s1378_s7 = sshll.u32 %s2843_s20, 3  ;;  %s3752_s28 = sld [smem:[#allocation99_spill]] }
 0x106   : > { %s521_s24 = sadd.s32 %s1378_s7, %s1377_s11  ;;  %s3615_s13 = scalar_lea.sflag [#allocation15], %s2783_s14 }
 0x107   : > { %s1379_s22 = sshll.u32 %s521_s24, 6 }
 0x109   : > { %s429_s29 = sand.u32 1, %s3751_s30  }
 0x10b   : > { %s3753_s15 = smov %s3752_s28  ;;  %s2894_s26 = scalar_lea.hbm %s3752_s28, %s1379_s22 }
 0x10c   : > { %s1842_s5 = scalar_lea.hbm %s2894_s26, 128  ;;  %s1846_s20 = scalar_lea.hbm %s3753_s15, 1024 }
 0x10d   : > { %p1843_p1 = scmp.ne.s32.totalorder %s2894_s26, %s1842_s5  ;;  %p1847_p6 = scmp.lt.u32.totalorder %s2894_s26, %s3753_s15 }
 0x10e   : > { %p1848_p4 = scmp.lt.u32.totalorder %s1846_s20, %s1842_s5  ;;  %p1850_p5 = scmp.lt.u32.totalorder %s1842_s5, %s2894_s26 }
 0x10f   : > { %p1844_p11 = pnand %p1843_p1, %p3746_p12 }
 0x110   : > { %p1849_p8 = por %p1848_p4, %p1847_p6 }
 0x111   : > { %p1845_p3 = pneg %p1844_p11 }
 0x112   : > { %p1851_p7 = por %p1850_p5, %p1849_p8 }
 0x114   : > { %p1852_p9 = pnand %p1851_p7, %p1845_p3 }
 0x116   : > { %1855 = shalt.err (!%p1852_p9)
}
 0x117   : > { %s1856_s7 = scalar_lea.vmem %s2851_s2, 128  ;;  %s2306_s24 = smov [#allocation14]  }
 0x118   : > { %p1857_p13 = scmp.ne.s32.totalorder %s2851_s2, %s1856_s7  ;;  %s1860_s22 = sshll.u32 %s2306_s24, 4  ;;  %s1861_s22 = int_to_ptr.vmem [resolvable:$false] %s1860_s22 }
 0x119   : > { %s1862_s21 = scalar_lea.vmem %s1861_s22, 256  ;;  %p1863_p0 = scmp.lt.s32.totalorder %s2851_s2, %s1861_s22 }
 0x11a   : > { %p1858_p2 = pnand %p1857_p13, %p3746_p12  ;;  %p1864_p1 = scmp.lt.s32.totalorder %s1862_s21, %s1856_s7 }
 0x11c   : > { %p1859_p10 = pneg %p1858_p2  ;;  %p1865_p11 = por %p1864_p1, %p1863_p0 }
 0x11e   : > { %p1866_p6 = pnand %p1865_p11, %p1859_p10 }
 0x120   : > { %1869 = shalt.err (!%p1866_p6)
}
 0x121   : > { %s3754_s5 = sld [smem:[#allocation72_spill]]  ;;  %s3755_s1 = sld [smem:[#allocation80_spill]] }
 0x122   : > { %s3756_s28 = sld [smem:[#allocation76_spill]]  ;;  %s3758_s19 = sld [smem:[#allocation60_spill]] }
 0x123   : > { %1457 = dma.hbm_to_vmem [thread:$0]  (%p3746_p12), %s2894_s26, 128, %s2851_s2, %s3615_s13, %s3750_s25, %s3750_s25, %s3749_s9  }
 0x124   : > { %s378_s11 = scalar_lea.vmem [#allocation5], %s2860_s3  ;;  %s1360_s22 = sshll.u32 %s429_s29, 3 }
 0x125   : > { %s390_s7 = sshll.u32 %s378_s11, 4  ;;  %s431_s29 = scalar_lea.vmem [#allocation10], %s1360_s22  ;;  %s2946_s7 = int_to_ptr.vmem [resolvable:$true] %s390_s7 }
 0x126   : > { %s3760_s23 = sld [smem:[#allocation94_spill]] }
 0x127   : > { %p3757_p3 = scmp.ne.s32.totalorder %s3754_s5, 0  ;;  %p3759_p4 = scmp.ne.s32.totalorder %s3755_s1, 0 }
 0x129   : > { %s1428_s18 = scalar_select %p3757_p3, [#allocation3], [#allocation20] }
 0x12a   : > { %s1429_s8 = scalar_select %p3757_p3, %s2534_s0, 0 }
 0x12b   : > { %s1430_s20 = scalar_select %p3757_p3, [#allocation4], [#allocation21] }
 0x12c   : > { %s380_s6 = sld [smem:[%s1428_s18 + %s1429_s8]]  ;;  %s483_s18 = sand.u32 1, %s3758_s19  }
 0x12d   : > { %s381_s24 = sld [smem:[%s1430_s20 + %s1429_s8]]  ;;  %s2948_s8 = sshll.u32 %s431_s29, 4  ;;  %s2989_s8 = int_to_ptr.vmem [resolvable:$true] %s2948_s8 }
 0x12e   : > { %s1438_s21 = scalar_select %p3759_p4, [#allocation3], [#allocation24] }
 0x12f   : > { %s1439_s16 = scalar_select %p3759_p4, %s3756_s28, 0 }
 0x130   : > { %s1440_s2 = scalar_select %p3759_p4, [#allocation4], [#allocation25] }
 0x131   : > { %s2941_s26 = sld [smem:[%s1438_s21 + %s1439_s16]]  ;;  %s3761_s9 = smov %s3760_s23 }
 0x132   : > { %s1353_s13 = sshll.u32 %s380_s6, 3  ;;  %s2943_s10 = sld [smem:[%s1440_s2 + %s1439_s16]] }
 0x133   : > { %s1352_s15 = sshll.u32 %s381_s24, 1  ;;  %s2955_s16 = sshll.u32 %s483_s18, 3 }
 0x134   : > { %s387_s3 = sadd.s32 %s1353_s13, %s1352_s15  ;;  %s3762_s6 = sand.u32 1, %s3745_s4  }
 0x135   : > { %s1354_s30 = sshll.u32 %s387_s3, 6  ;;  %s2959_s19 = scalar_lea.sflag [#allocation6], %s3762_s6 }
 0x136   : > { %s2953_s17 = scalar_lea.hbm %s3760_s23, %s1354_s30  ;;  %s1874_s22 = scalar_lea.hbm %s3761_s9, 1024 }
 0x137   : > { %s1870_s15 = scalar_lea.hbm %s2953_s17, 128  ;;  %p1875_p7 = scmp.lt.u32.totalorder %s2953_s17, %s3761_s9 }
 0x138   : > { %p1871_p12 = scmp.ne.s32.totalorder %s2953_s17, %s1870_s15  ;;  %p1876_p9 = scmp.lt.u32.totalorder %s1874_s22, %s1870_s15 }
 0x139   : > { %p1878_p2 = scmp.lt.u32.totalorder %s1870_s15, %s2953_s17 }
 0x13a   : > { %p1872_p8 = pnand %p1871_p12, %p3757_p3  ;;  %p1877_p13 = por %p1876_p9, %p1875_p7 }
 0x13c   : > { %p1873_p5 = pneg %p1872_p8  ;;  %p1879_p10 = por %p1878_p2, %p1877_p13 }
 0x13e   : > { %p1880_p0 = pnand %p1879_p10, %p1873_p5 }
 0x140   : > { %1883 = shalt.err (!%p1880_p0)
}
 0x141   : > { %s1884_s4 = scalar_lea.vmem %s2946_s7, 128  ;;  %s2307_s2 = smov [#allocation5]  }
 0x142   : > { %p1885_p1 = scmp.ne.s32.totalorder %s2946_s7, %s1884_s4  ;;  %s1888_s18 = sshll.u32 %s2307_s2, 4  ;;  %s1889_s18 = int_to_ptr.vmem [resolvable:$false] %s1888_s18 }
 0x143   : > { %s1890_s3 = scalar_lea.vmem %s1889_s18, 256  ;;  %p1891_p12 = scmp.lt.s32.totalorder %s2946_s7, %s1889_s18 }
 0x144   : > { %p1886_p11 = pnand %p1885_p1, %p3757_p3  ;;  %p1892_p8 = scmp.lt.s32.totalorder %s1890_s3, %s1884_s4 }
 0x146   : > { %p1887_p6 = pneg %p1886_p11  ;;  %p1893_p7 = por %p1892_p8, %p1891_p12 }
 0x148   : > { %p1894_p9 = pnand %p1893_p7, %p1887_p6 }
 0x14a   : > { %1897 = shalt.err (!%p1894_p9)
}
 0x14b   : > { %s3763_s30 = smov 4   ;;  %s3764_s29 = sld [smem:[#allocation49_spill]] }
 0x14c   : > { %1432 = dma.hbm_to_vmem [thread:$0]  (%p3757_p3), %s2953_s17, 128, %s2946_s7, %s2959_s19, %s3750_s25, %s3750_s25, %s3763_s30  }
 0x14d   : > { %s1362_s20 = sshll.u32 %s2943_s10, 1  ;;  %s1363_s11 = sshll.u32 %s2941_s26, 3 }
 0x14e   : > { %s441_s6 = sadd.s32 %s1363_s11, %s1362_s20  ;;  %s3765_s24 = sld [smem:[#allocation96_spill]] }
 0x14f   : > { %s1364_s15 = sshll.u32 %s441_s6, 6 }
 0x151   : > { %s536_s23 = sand.u32 1, %s3764_s29  }
 0x154   : > { %s3766_s3 = smov %s3765_s24  ;;  %s2994_s22 = scalar_lea.hbm %s3765_s24, %s1364_s15 }
 0x155   : > { %s1898_s21 = scalar_lea.hbm %s2994_s22, 128  ;;  %s1902_s7 = scalar_lea.hbm %s3766_s3, 1024 }
 0x156   : > { %p1899_p5 = scmp.ne.s32.totalorder %s2994_s22, %s1898_s21  ;;  %p1903_p2 = scmp.lt.u32.totalorder %s2994_s22, %s3766_s3 }
 0x157   : > { %p1904_p10 = scmp.lt.u32.totalorder %s1902_s7, %s1898_s21  ;;  %p1906_p1 = scmp.lt.u32.totalorder %s1898_s21, %s2994_s22 }
 0x158   : > { %p1900_p3 = pnand %p1899_p5, %p3759_p4 }
 0x159   : > { %p1905_p0 = por %p1904_p10, %p1903_p2 }
 0x15a   : > { %p1901_p13 = pneg %p1900_p3 }
 0x15b   : > { %p1907_p11 = por %p1906_p1, %p1905_p0 }
 0x15d   : > { %p1908_p6 = pnand %p1907_p11, %p1901_p13 }
 0x15f   : > { %1911 = shalt.err (!%p1908_p6)
}
 0x160   : > { %s1912_s4 = scalar_lea.vmem %s2989_s8, 128  ;;  %s2308_s2 = smov [#allocation10]  }
 0x161   : > { %p1913_p12 = scmp.ne.s32.totalorder %s2989_s8, %s1912_s4  ;;  %s1916_s18 = sshll.u32 %s2308_s2, 4  ;;  %s1917_s18 = int_to_ptr.vmem [resolvable:$false] %s1916_s18 }
 0x162   : > { %s1918_s20 = scalar_lea.vmem %s1917_s18, 256  ;;  %p1919_p9 = scmp.lt.s32.totalorder %s2989_s8, %s1917_s18 }
 0x163   : > { %p1914_p8 = pnand %p1913_p12, %p3759_p4  ;;  %p1920_p5 = scmp.lt.s32.totalorder %s1918_s20, %s1912_s4 }
 0x165   : > { %p1915_p7 = pneg %p1914_p8  ;;  %p1921_p3 = por %p1920_p5, %p1919_p9 }
 0x167   : > { %p1922_p2 = pnand %p1921_p3, %p1915_p7 }
 0x169   : > { %1925 = shalt.err (!%p1922_p2)
}
 0x16a   : > { %s3767_s11 = scalar_lea.sflag [#allocation9], %s2783_s14  ;;  %s3768_s6 = sld [smem:[#allocation55_spill]] }
 0x16b   : > { %1442 = dma.hbm_to_vmem [thread:$0]  (%p3759_p4), %s2994_s22, 128, %s2989_s8, %s3767_s11, %s3750_s25, %s3750_s25, %s3763_s30  }
 0x16c   : > { %s485_s5 = scalar_lea.vmem [#allocation13], %s2955_s16  ;;  %s3770_s21 = sld [smem:[#allocation53_spill]] }
 0x16d   : > { %s497_s24 = sshll.u32 %s485_s5, 4  ;;  %s1380_s10 = sshll.u32 %s536_s23, 3  ;;  %s3044_s24 = int_to_ptr.vmem [resolvable:$true] %s497_s24 }
 0x16e   : > { %p3771_p10 = scmp.ne.s32.totalorder %s3719_s27, 0  ;;  %s3772_s20 = sld [smem:[#allocation98_spill]] }
 0x170   : > { %p3769_p13 = scmp.ne.s32.totalorder %s3768_s6, 0  ;;  %s3874_s28 = smov (!%p3771_p10, %s3756_s28), 0 }
 0x171   : > { %s1458_s7 = scalar_select %p3771_p10, [#allocation3], [#allocation32] }
 0x172   : > { %s1448_s1 = scalar_select %p3769_p13, [#allocation3], [#allocation28] }
 0x173   : > { %s3872_s0 = smov (!%p3769_p13, %s2534_s0), 0  ;;  %s3040_s22 = sld [smem:[%s1458_s7 + %s3874_s28]] }
 0x174   : > { %s1450_s15 = scalar_select %p3769_p13, [#allocation4], [#allocation29] }
 0x175   : > { %s487_s13 = sld [smem:[%s1448_s1 + %s3872_s0]]  ;;  %s3621_s1 = sand.u32 1, %s3770_s21  }
 0x176   : > { %s488_s17 = sld [smem:[%s1450_s15 + %s3872_s0]]  ;;  %s538_s0 = scalar_lea.vmem [#allocation16], %s1380_s10 }
 0x177   : > { %s1460_s8 = scalar_select %p3771_p10, [#allocation4], [#allocation33] }
 0x178   : > { %s3046_s29 = sshll.u32 %s538_s0, 4  ;;  %s3773_s15 = smov %s3772_s20  ;;  %s3083_s29 = int_to_ptr.vmem [resolvable:$true] %s3046_s29 }
 0x179   : > { %s3042_s19 = sld [smem:[%s1460_s8 + %s3874_s28]] }
 0x17b   : > { %s1373_s26 = sshll.u32 %s487_s13, 3 }
 0x17c   : > { %s1372_s4 = sshll.u32 %s488_s17, 1  ;;  %s1930_s17 = scalar_lea.hbm %s3773_s15, 1024 }
 0x17d   : > { %s494_s2 = sadd.s32 %s1373_s26, %s1372_s4 }
 0x17e   : > { %s1374_s16 = sshll.u32 %s494_s2, 6 }
 0x17f   : > { %s3051_s11 = scalar_lea.hbm %s3772_s20, %s1374_s16 }
 0x180   : > { %s1926_s28 = scalar_lea.hbm %s3051_s11, 128  ;;  %p1931_p11 = scmp.lt.u32.totalorder %s3051_s11, %s3773_s15 }
 0x181   : > { %p1927_p4 = scmp.ne.s32.totalorder %s3051_s11, %s1926_s28  ;;  %p1932_p6 = scmp.lt.u32.totalorder %s1930_s17, %s1926_s28 }
 0x182   : > { %p1934_p8 = scmp.lt.u32.totalorder %s1926_s28, %s3051_s11 }
 0x183   : > { %p1928_p0 = pnand %p1927_p4, %p3769_p13  ;;  %p1933_p12 = por %p1932_p6, %p1931_p11 }
 0x185   : > { %p1929_p1 = pneg %p1928_p0  ;;  %p1935_p7 = por %p1934_p8, %p1933_p12 }
 0x187   : > { %p1936_p9 = pnand %p1935_p7, %p1929_p1 }
 0x189   : > { %1939 = shalt.err (!%p1936_p9)
}
 0x18a   : > { %s1940_s8 = scalar_lea.vmem %s3044_s24, 128  ;;  %s2309_s26 = smov [#allocation13]  }
 0x18b   : > { %p1941_p5 = scmp.ne.s32.totalorder %s3044_s24, %s1940_s8  ;;  %s1944_s4 = sshll.u32 %s2309_s26, 4  ;;  %s1945_s4 = int_to_ptr.vmem [resolvable:$false] %s1944_s4 }
 0x18c   : > { %s1946_s2 = scalar_lea.vmem %s1945_s4, 256  ;;  %p1947_p4 = scmp.lt.s32.totalorder %s3044_s24, %s1945_s4 }
 0x18d   : > { %p1942_p3 = pnand %p1941_p5, %p3769_p13  ;;  %p1948_p0 = scmp.lt.s32.totalorder %s1946_s2, %s1940_s8 }
 0x18f   : > { %p1943_p2 = pneg %p1942_p3  ;;  %p1949_p11 = por %p1948_p0, %p1947_p4 }
 0x191   : > { %p1950_p6 = pnand %p1949_p11, %p1943_p2 }
 0x193   : > { %1953 = shalt.err (!%p1950_p6)
}
 0x194   : > { %s3774_s16 = scalar_lea.sflag [#allocation12], %s2783_s14  ;;  %s1382_s0 = sshll.u32 %s3042_s19, 1 }
 0x195   : > { %1452 = dma.hbm_to_vmem [thread:$0]  (%p3769_p13), %s3051_s11, 128, %s3044_s24, %s3774_s16, %s3750_s25, %s3750_s25, %s3763_s30  }
 0x196   : > { %s1383_s23 = sshll.u32 %s3040_s22, 3  ;;  %s3775_s13 = sld [smem:[#allocation100_spill]] }
 0x197   : > { %s548_s18 = sadd.s32 %s1383_s23, %s1382_s0  ;;  %s3092_s10 = sshll.u32 %s3621_s1, 3 }
 0x198   : > { %s1384_s20 = sshll.u32 %s548_s18, 6 }
 0x19c   : > { %s3776_s5 = smov %s3775_s13  ;;  %s3088_s17 = scalar_lea.hbm %s3775_s13, %s1384_s20 }
 0x19d   : > { %s1954_s7 = scalar_lea.hbm %s3088_s17, 128  ;;  %s1958_s19 = scalar_lea.hbm %s3776_s5, 1024 }
 0x19e   : > { %p1955_p13 = scmp.ne.s32.totalorder %s3088_s17, %s1954_s7  ;;  %p1959_p8 = scmp.lt.u32.totalorder %s3088_s17, %s3776_s5 }
 0x19f   : > { %p1960_p7 = scmp.lt.u32.totalorder %s1958_s19, %s1954_s7  ;;  %p1962_p5 = scmp.lt.u32.totalorder %s1954_s7, %s3088_s17 }
 0x1a0   : > { %p1956_p1 = pnand %p1955_p13, %p3771_p10 }
 0x1a1   : > { %p1961_p9 = por %p1960_p7, %p1959_p8 }
 0x1a2   : > { %p1957_p12 = pneg %p1956_p1 }
 0x1a3   : > { %p1963_p3 = por %p1962_p5, %p1961_p9 }
 0x1a5   : > { %p1964_p2 = pnand %p1963_p3, %p1957_p12 }
 0x1a7   : > { %1967 = shalt.err (!%p1964_p2)
}
 0x1a8   : > { %s1968_s26 = scalar_lea.vmem %s3083_s29, 128  ;;  %s2310_s4 = smov [#allocation16]  }
 0x1a9   : > { %p1969_p4 = scmp.ne.s32.totalorder %s3083_s29, %s1968_s26  ;;  %s1972_s2 = sshll.u32 %s2310_s4, 4  ;;  %s1973_s2 = int_to_ptr.vmem [resolvable:$false] %s1972_s2 }
 0x1aa   : > { %s1974_s16 = scalar_lea.vmem %s1973_s2, 256  ;;  %p1975_p6 = scmp.lt.s32.totalorder %s3083_s29, %s1973_s2 }
 0x1ab   : > { %p1970_p0 = pnand %p1969_p4, %p3771_p10  ;;  %p1976_p13 = scmp.lt.s32.totalorder %s1974_s16, %s1968_s26 }
 0x1ad   : > { %p1971_p11 = pneg %p1970_p0  ;;  %p1977_p1 = por %p1976_p13, %p1975_p6 }
 0x1af   : > { %p1978_p8 = pnand %p1977_p1, %p1971_p11 }
 0x1b1   : > { %1981 = shalt.err (!%p1978_p8)
}
 0x1b2   : > { %s3777_s0 = scalar_lea.sflag [#allocation15], %s2783_s14  ;;  %s3778_s23 = sld [smem:[#allocation79_spill]] }
 0x1b3   : > { %1462 = dma.hbm_to_vmem [thread:$0]  (%p3771_p10), %s3088_s17, 128, %s3083_s29, %s3777_s0, %s3750_s25, %s3750_s25, %s3763_s30  }
 0x1b4   : > { %p3779_p12 = scmp.ne.s32.totalorder %s3728_s12, 0  ;;  %s565_s28 = scalar_lea.vmem [#allocation17], %s3092_s10 }
 0x1b5   : > { %s578_s14 = sshll.u32 %s565_s28, 4  ;;  %s3780_s29 = sld [smem:[#allocation101_spill]]  ;;  %s3128_s14 = int_to_ptr.vmem [resolvable:$true] %s578_s14 }
 0x1b6   : > { %s1463_s18 = scalar_select %p3779_p12, [#allocation3], [#allocation34] }
 0x1b7   : > { %s1465_s27 = scalar_select %p3779_p12, [#allocation4], [#allocation35] }
 0x1b8   : > { %s3876_s23 = smov (!%p3779_p12, %s3778_s23), 0  ;;  %s3782_s8 = sand.u32 1, %s3770_s21  }
 0x1b9   : > { %s568_s20 = sld [smem:[%s1463_s18 + %s3876_s23]]  ;;  %s3137_s26 = scalar_lea.sflag [#allocation18], %s3782_s8 }
 0x1ba   : > { %s569_s6 = sld [smem:[%s1465_s27 + %s3876_s23]] }
 0x1bb   : > { %s3781_s1 = smov %s3780_s29 }
 0x1bc   : > { %s1986_s16 = scalar_lea.hbm %s3781_s1, 1024 }
 0x1bf   : > { %s1388_s13 = sshll.u32 %s568_s20, 3 }
 0x1c0   : > { %s1387_s7 = sshll.u32 %s569_s6, 1 }
 0x1c1   : > { %s575_s24 = sadd.s32 %s1388_s13, %s1387_s7 }
 0x1c2   : > { %s1389_s22 = sshll.u32 %s575_s24, 6 }
 0x1c3   : > { %s3133_s17 = scalar_lea.hbm %s3780_s29, %s1389_s22 }
 0x1c4   : > { %s1982_s10 = scalar_lea.hbm %s3133_s17, 128  ;;  %p1987_p5 = scmp.lt.u32.totalorder %s3133_s17, %s3781_s1 }
 0x1c5   : > { %p1983_p10 = scmp.ne.s32.totalorder %s3133_s17, %s1982_s10  ;;  %p1988_p3 = scmp.lt.u32.totalorder %s1986_s16, %s1982_s10 }
 0x1c6   : > { %p1990_p4 = scmp.lt.u32.totalorder %s1982_s10, %s3133_s17 }
 0x1c7   : > { %p1984_p7 = pnand %p1983_p10, %p3779_p12  ;;  %p1989_p2 = por %p1988_p3, %p1987_p5 }
 0x1c9   : > { %p1985_p9 = pneg %p1984_p7  ;;  %p1991_p0 = por %p1990_p4, %p1989_p2 }
 0x1cb   : > { %p1992_p11 = pnand %p1991_p0, %p1985_p9 }
 0x1cd   : > { %1995 = shalt.err (!%p1992_p11)
}
 0x1ce   : > { %s1996_s21 = scalar_lea.vmem %s3128_s14, 128  ;;  %s2311_s18 = smov [#allocation17]  }
 0x1cf   : > { %p1997_p6 = scmp.ne.s32.totalorder %s3128_s14, %s1996_s21  ;;  %s2000_s27 = sshll.u32 %s2311_s18, 4  ;;  %s2001_s27 = int_to_ptr.vmem [resolvable:$false] %s2000_s27 }
 0x1d0   : > { %s2002_s20 = scalar_lea.vmem %s2001_s27, 256  ;;  %p2003_p8 = scmp.lt.s32.totalorder %s3128_s14, %s2001_s27 }
 0x1d1   : > { %p1998_p13 = pnand %p1997_p6, %p3779_p12  ;;  %p2004_p10 = scmp.lt.s32.totalorder %s2002_s20, %s1996_s21 }
 0x1d3   : > { %p1999_p1 = pneg %p1998_p13  ;;  %p2005_p7 = por %p2004_p10, %p2003_p8 }
 0x1d5   : > { %p2006_p5 = pnand %p2005_p7, %p1999_p1 }
 0x1d7   : > { %2009 = shalt.err (!%p2006_p5)
}
 0x1d8   : > { %1467 = dma.hbm_to_vmem [thread:$0]  (%p3779_p12), %s3133_s17, 128, %s3128_s14, %s3137_s26, %s3750_s25, %s3750_s25, %s3763_s30  }
 0x1d9 PF: > { %s3783_s6 = sld [smem:[#allocation69_spill]] }
 0x1df   : > { %p1390_p9 = scmp.ge.s32.totalorder %s3783_s6, 1  ;;  %p586_p3 = scmp.lt.s32.totalorder %s3783_s6, 3 }
 0x1e1   : > { %p587_p2 = pnand %p1390_p9, %p586_p3 }
 0x1e2   : > { %s3784_s28 = sld [smem:[#allocation67_spill]] (!%p587_p2)  ;;  %s3785_s13 = sld [smem:[#allocation73_spill]] (!%p587_p2) }
 0x1e3   : > { %590 = sbr.rel (%p587_p2) target bundleno = 974 (0x3ce), region = 52 }
 0x1e8   : > { %s592_s7 = sand.u32 (!%p587_p2), 1, %s3784_s28   ;;  %p3786_p4 = scmp.ne.s32.totalorder (!%p587_p2), %s3785_s13, 0 }
 0x1e9   : > { %s3167_s24 = sshll.u32 (!%p587_p2), %s592_s7, 3  ;;  %s593_s12 = scalar_lea.sflag (!%p587_p2), [#allocation6], %s592_s7 }
 0x1ea   : > { %s596_s22 = scalar_lea.vmem [#allocation5], %s3167_s24 }
 0x1eb   : > { %2153 = dma.done.wait (%p3786_p4), %s593_s12, 128  }
 0x1ec   : > { %2155 = vsyncadd (%p3786_p4), %s593_s12, 4294967168  ;;  %s3787_s25 = sld [smem:[#allocation70_spill]]  ;;  %s3788_s30 = sld [smem:[#allocation65_spill]] }
 0x1ed   : > { %s3789_s14 = sld [smem:[#allocation77_spill]] }
 0x1f2   : > { %s601_s19 = sand.u32 1, %s3787_s25   ;;  %s603_s11 = sand.u32 1, %s3788_s30  }
 0x1f3   : > { %s3176_s29 = sshll.u32 %s603_s11, 3  ;;  %s602_s17 = scalar_lea.sflag [#allocation9], %s601_s19 }
 0x1f4   : > { %s605_s8 = scalar_lea.vmem [#allocation8], %s3176_s29  ;;  %p3790_p12 = scmp.ne.s32.totalorder %s3789_s14, 0 }
 0x1f6   : > { %2157 = dma.done.wait (%p3790_p12), %s602_s17, 128  }
 0x1f7   : > { %2159 = vsyncadd (%p3790_p12), %s602_s17, 4294967168  ;;  %s3791_s26 = sld [smem:[#allocation63_spill]]  ;;  %s3792_s10 = sld [smem:[#allocation81_spill]] }
 0x1fd   : > { %s612_s4 = sand.u32 1, %s3791_s26   ;;  %p3793_p0 = scmp.ne.s32.totalorder %s3792_s10, 0 }
 0x1fe   : > { %s3184_s2 = sshll.u32 %s612_s4, 3 }
 0x1ff   : > { %s614_s16 = scalar_lea.vmem [#allocation10], %s3184_s2 }
 0x200   : > { %2161 = dma.done.wait (%p3793_p0), %s602_s17, 128  }
 0x201   : > { %2163 = vsyncadd (%p3793_p0), %s602_s17, 4294967168  ;;  %s3794_s0 = sld [smem:[#allocation61_spill]]  ;;  %s620_s27 = scalar_lea.sflag [#allocation12], %s601_s19 }
 0x202   : > { %s3795_s23 = sld [smem:[#allocation83_spill]] }
 0x207   : > { %s621_s21 = sand.u32 1, %s3794_s0  }
 0x208   : > { %s3192_s18 = sshll.u32 %s621_s21, 3  ;;  %p3796_p11 = scmp.ne.s32.totalorder %s3795_s23, 0 }
 0x209   : > { %s623_s20 = scalar_lea.vmem [#allocation11], %s3192_s18 }
 0x20a   : > { %2165 = dma.done.wait (%p3796_p11), %s620_s27, 128  }
 0x20b   : > { %2167 = vsyncadd (%p3796_p11), %s620_s27, 4294967168  ;;  %s3797_s6 = sld [smem:[#allocation59_spill]]  ;;  %s3798_s28 = sld [smem:[#allocation85_spill]] }
 0x211   : > { %s630_s13 = sand.u32 1, %s3797_s6   ;;  %p3799_p6 = scmp.ne.s32.totalorder %s3798_s28, 0 }
 0x212   : > { %s3200_s7 = sshll.u32 %s630_s13, 3 }
 0x213   : > { %s632_s12 = scalar_lea.vmem [#allocation13], %s3200_s7 }
 0x214   : > { %2169 = dma.done.wait (%p3799_p6), %s620_s27, 128  }
 0x215   : > { %2171 = vsyncadd (%p3799_p6), %s620_s27, 4294967168  ;;  %s3800_s30 = sld [smem:[#allocation56_spill]]  ;;  %s3801_s14 = sld [smem:[#allocation54_spill]] }
 0x216   : > { %s638_s26 = scalar_lea.sflag [#allocation15], %s601_s19 }
 0x21b   : > { %s639_s11 = sand.u32 1, %s3800_s30   ;;  %p3802_p13 = scmp.ne.s32.totalorder %s3801_s14, 0 }
 0x21c   : > { %s3208_s17 = sshll.u32 %s639_s11, 3 }
 0x21d   : > { %s641_s10 = scalar_lea.vmem [#allocation14], %s3208_s17 }
 0x21e   : > { %2173 = dma.done.wait (%p3802_p13), %s638_s26, 128  }
 0x21f   : > { %2175 = vsyncadd (%p3802_p13), %s638_s26, 4294967168  ;;  %s3803_s4 = sld [smem:[#allocation48_spill]]  ;;  %s3804_s0 = sld [smem:[#allocation51_spill]] }
 0x225   : > { %s648_s23 = sand.u32 1, %s3803_s4   ;;  %p3805_p1 = scmp.ne.s32.totalorder %s3804_s0, 0 }
 0x226   : > { %s3216_s21 = sshll.u32 %s648_s23, 3 }
 0x227   : > { %s650_s27 = scalar_lea.vmem [#allocation16], %s3216_s21 }
 0x228   : > { %2177 = dma.done.wait (%p3805_p1), %s638_s26, 128  }
 0x229   : > { %2179 = vsyncadd (%p3805_p1), %s638_s26, 4294967168  ;;  %s3806_s6 = sld [smem:[#allocation52_spill]] }
 0x22a   : > { %s3807_s19 = sld [smem:[#allocation89_spill]] }
 0x22f   : > { %s655_s28 = sand.u32 1, %s3806_s6  }
 0x230   : > { %s3224_s13 = sshll.u32 %s655_s28, 3  ;;  %s656_s30 = scalar_lea.sflag [#allocation18], %s655_s28 }
 0x231   : > { %s659_s14 = scalar_lea.vmem [#allocation17], %s3224_s13  ;;  %p3808_p8 = scmp.ne.s32.totalorder %s3807_s19, 0 }
 0x233   : > { %2181 = dma.done.wait (%p3808_p8), %s656_s30, 128  }
 0x234   : > { %2183 = vsyncadd (%p3808_p8), %s656_s30, 4294967168  ;;  %v2312_v0 = vmov 0   ;;  %v763_v1 = vld [vmem:[%s596_s22] sm:$0xf]  ;;  %v764_v2 = vld [vmem:[%s596_s22 + $0x4] sm:$0xf] }
 0x235   : > { %1716 = vset.pattern.permute.xlu0 %v2312_v0  ;;  %1722 = vset.pattern.permute.xlu1 %v2312_v0  ;;  %v767_v3 = vmul.bf16 1056980736, %v763_v1  ;;  %v768_v4 = vmul.bf16 1056980736, %v764_v2  ;;  %v825_v5 = vld [vmem:[%s605_s8] sm:$0xf] }
 0x236   : > { %v829_v6 = vmul.bf16 1056980736, %v825_v5  ;;  %v826_v7 = vld [vmem:[%s605_s8 + $0x4] sm:$0xf]  ;;  %v886_v9 = vld [vmem:[%s614_s16] sm:$0xf] }
 0x237   : > { %1742 = vtanh.bf16 %v767_v3  ;;  %v830_v8 = vmul.bf16 1056980736, %v826_v7  ;;  %v890_v10 = vmul.bf16 1056980736, %v886_v9  ;;  %v887_v11 = vld [vmem:[%s614_s16 + $0x4] sm:$0xf] }
 0x238   : > { %1744 = vtanh.bf16 %v768_v4  ;;  %v891_v12 = vmul.bf16 1056980736, %v887_v11  ;;  %v947_v13 = vld [vmem:[%s623_s20] sm:$0xf]  ;;  %v948_v15 = vld [vmem:[%s623_s20 + $0x4] sm:$0xf] }
 0x239   : > { %1746 = vtanh.bf16 %v829_v6  ;;  %v951_v14 = vmul.bf16 1056980736, %v947_v13  ;;  %v952_v19 = vmul.bf16 1056980736, %v948_v15  ;;  %v765_v21 = vld [vmem:[%s632_s12] sm:$0xf] }
 0x23a   : > { %1748 = vtanh.bf16 %v830_v8  ;;  %v766_v25 = vld [vmem:[%s632_s12 + $0x4] sm:$0xf]  ;;  %v3255_v28 = vld [vmem:[%s641_s10] sm:$0xf]  ;;  %vm779_vm0 = vcmask 130048   ;;  %s3809_s24 = sld [smem:[#allocation47_spill]] }
 0x23b   : > { %1750 = vtanh.bf16 %v890_v10  ;;  %v3265_v41 = vld [vmem:[%s641_s10 + $0x4] sm:$0xf]  ;;  %v3275_v54 = vld [vmem:[%s650_s27] sm:$0xf]  ;;  %vm796_vm1 = vcmp.ne.bf16.partialorder %v765_v21, 3212885888 }
 0x23c   : > { %1752 = vtanh.bf16 %v891_v12  ;;  %vm797_vm2 = vcmp.ne.bf16.partialorder %v766_v25, 3212885888  ;;  %v3281_v59 = vld [vmem:[%s650_s27 + $0x4] sm:$0xf]  ;;  %v798_v63 = vsel %vm796_vm1, 65537, %v2312_v0  ;;  %s3810_s8 = sld [smem:[#allocation92_spill]] }
 0x23d   : > { %1754 = vtanh.bf16 %v951_v14  ;;  %v799_v1 = vsel %vm797_vm2, 65537, %v2312_v0  ;;  %v3289_v6 = vld [vmem:[%s659_s14] sm:$0xf]  ;;  %v800_v7 = vunpack.c.l.b16 %v798_v63  ;;  %v950_v13 = vld [vmem:[%s659_s14 + $0x4] sm:$0xf]  ;;  %s1409_s2 = sshll.u32 %s3787_s25, 7 }
 0x23e   : > { %1756 = vtanh.bf16 %v952_v19  ;;  %v801_v8 = vunpack.c.l.b16 %v799_v1  ;;  %vm857_vm5 = vcmp.ne.bf16.partialorder %v3255_v28, 3212885888  ;;  %vm858_vm6 = vcmp.ne.bf16.partialorder %v3265_v41, 3212885888  ;;  %s3811_s12 = sld [smem:[#allocation102_spill]]  ;;  %s2317_s26 = smov [#allocation19]  }
 0x23f   : > { %vm802_vm3 = vcmp.ne.s32.totalorder %v800_v7, 0  ;;  %vm918_vm7 = vcmp.ne.bf16.partialorder %v3275_v54, 3212885888  ;;  %vm919_vm8 = vcmp.ne.bf16.partialorder %v3281_v59, 3212885888  ;;  %v761_v7 = vlaneseq  ;;  %s2014_s4 = sshll.u32 %s2317_s26, 4  ;;  %s2015_s4 = int_to_ptr.vmem [resolvable:$false] %s2014_s4 }
 0x240   : > { %vm803_vm4 = vcmp.ne.s32.totalorder %v801_v8, 0  ;;  %vm979_vm9 = vcmp.ne.bf16.partialorder %v3289_v6, 3212885888  ;;  %vm980_vm10 = vcmp.ne.bf16.partialorder %v950_v13, 3212885888  ;;  %s724_s22 = sand.u32 1, %s3809_s24  }
 0x241   : > { %s1399_s29 = sshll.u32 %s724_s22, 3  ;;  %s1072_s17 = scalar_lea.sflag [#allocation7], %s724_s22 }
 0x242   : > { %v1743_v16 = vpop.eup %1742  ;;  %s726_s16 = scalar_lea.vmem [#allocation19], %s1399_s29  ;;  %p3813_p7 = scmp.ne.s32.totalorder %s3810_s8, 0 }
 0x243   : > { %v1745_v17 = vpop.eup %1744  ;;  %v771_v18 = vmul.bf16 1056980736, %v1743_v16  ;;  %s1085_s18 = sshll.u32 %s726_s16, 4  ;;  %s2016_s0 = scalar_lea.vmem %s2015_s4, 256  ;;  %s3397_s18 = int_to_ptr.vmem [resolvable:$true] %s1085_s18 }
 0x244   : > { %v1747_v20 = vpop.eup %1746  ;;  %v772_v22 = vmul.bf16 1056980736, %v1745_v17  ;;  %v2313_v17 = vmov 0.0   ;;  %s3812_s10 = smov %s3811_s12  ;;  %s3395_s11 = scalar_lea.hbm %s3811_s12, %s1409_s2 }
 0x245   : > { %v1749_v23 = vpop.eup %1748  ;;  %v773_v24 = vadd.bf16 1056980736, %v771_v18  ;;  %v833_v26 = vmul.bf16 1056980736, %v1747_v20  ;;  %v1400_v18 = vsel %vm802_vm3, 1.0, %v2313_v17  ;;  %v1401_v19 = vsel %vm803_vm4, 1.0, %v2313_v17  ;;  %p2017_p3 = scmp.lt.s32.totalorder %s3397_s18, %s2015_s4 }
 0x246   : > { %v774_v27 = vadd.bf16 1056980736, %v772_v22  ;;  %v834_v29 = vmul.bf16 1056980736, %v1749_v23  ;;  %v1751_v30 = vpop.eup %1750  ;;  %v1717_v23 = vpack.i.bf16 %v1401_v19, %v1400_v18  ;;  %s2010_s25 = scalar_lea.vmem %s3397_s18, 128 }
 0x247   : > { %v786_v31 = vadd.bf16 %v773_v24, %v765_v21  ;;  %v775_v32 = vmul.bf16 %v773_v24, %v765_v21  ;;  %v3257_v33 = vadd.bf16 1056980736, %v833_v26  ;;  %v1753_v37 = vpop.eup %1752  ;;  %v894_v42 = vmul.bf16 1056980736, %v1751_v30  ;;  %p2011_p10 = scmp.ne.s32.totalorder %s3397_s18, %s2010_s25  ;;  %p2018_p2 = scmp.lt.s32.totalorder %s2016_s0, %s2010_s25 }
 0x248   : > { %v787_v34 = vadd.bf16 %v774_v27, %v766_v25  ;;  %v776_v35 = vmul.bf16 %v774_v27, %v766_v25  ;;  %v3259_v36 = vadd.bf16 1056980736, %v834_v29  ;;  %v895_v48 = vmul.bf16 1056980736, %v1753_v37  ;;  %v1755_v53 = vpop.eup %1754 }
 0x249   : > { %v788_v38 = vunpack.c.l.bf16 %v786_v31  ;;  %v777_v39 = vunpack.c.l.bf16 %v775_v32  ;;  %v847_v40 = vadd.bf16 %v3257_v33, %v3255_v28  ;;  %v896_v52 = vadd.bf16 1056980736, %v894_v42  ;;  %v1757_v61 = vpop.eup %1756  ;;  %p2012_p5 = pnand %p2011_p10, %p3813_p7  ;;  %p2019_p4 = por %p2018_p2, %p2017_p3 }
 0x24a   : > { %v789_v43 = vunpack.c.l.bf16 %v787_v34  ;;  %v778_v44 = vunpack.c.l.bf16 %v776_v35  ;;  %v848_v47 = vadd.bf16 %v3259_v36, %v3265_v41  ;;  %v897_v55 = vadd.bf16 1056980736, %v895_v48 }
 0x24b   : > { %v790_v45 = vsel %vm779_vm0, %v788_v38, 0.0  ;;  %v780_v46 = vsel %vm779_vm0, %v777_v39, 0.0  ;;  %v849_v51 = vunpack.c.l.bf16 %v847_v40  ;;  %v908_v58 = vadd.bf16 %v896_v52, %v3275_v54  ;;  %p2013_p9 = pneg %p2012_p5 }
 0x24c   : > { %791 = vadd.xlane.f32.xlu1 %v790_v45  ;;  %781 = vadd.xlane.f32.xlu0 %v780_v46  ;;  %v793_v49 = vsel %vm779_vm0, %v789_v43, 0.0  ;;  %v783_v50 = vsel %vm779_vm0, %v778_v44, 0.0  ;;  %v850_v57 = vunpack.c.l.bf16 %v848_v47  ;;  %v955_v60 = vmul.bf16 1056980736, %v1755_v53 }
 0x24d   : > { %v851_v56 = vsel %vm779_vm0, %v849_v51, 0.0  ;;  %v909_v62 = vadd.bf16 %v897_v55, %v3281_v59  ;;  %v910_v3 = vunpack.c.l.bf16 %v908_v58  ;;  %v956_v5 = vmul.bf16 1056980736, %v1757_v61  ;;  %p2020_p12 = pnand %p2019_p4, %p2013_p9 }
 0x24e   : > { %v854_v2 = vsel %vm779_vm0, %v850_v57, 0.0  ;;  %v957_v4 = vadd.bf16 1056980736, %v955_v60  ;;  %v837_v22 = vmul.bf16 %v3257_v33, %v3255_v28  ;;  %v838_v26 = vmul.bf16 %v3259_v36, %v3265_v41 }
 0x24f   : > { %v912_v9 = vsel %vm779_vm0, %v910_v3, 0.0  ;;  %v911_v10 = vunpack.c.l.bf16 %v909_v62  ;;  %v958_v12 = vadd.bf16 1056980736, %v956_v5  ;;  %v898_v30 = vmul.bf16 %v896_v52, %v3275_v54 }
 0x250   : > { %794 = vadd.xlane.f32.xlu1 %v793_v49  ;;  %784 = vadd.xlane.f32.xlu0 %v783_v50  ;;  %v969_v11 = vadd.bf16 %v957_v4, %v3289_v6  ;;  %v839_v25 = vunpack.c.l.bf16 %v837_v22  ;;  %v840_v29 = vunpack.c.l.bf16 %v838_v26  ;;  %v899_v33 = vmul.bf16 %v897_v55, %v3281_v59 }
 0x251   : > { %v915_v14 = vsel %vm779_vm0, %v911_v10, 0.0  ;;  %v970_v16 = vadd.bf16 %v958_v12, %v950_v13  ;;  %v900_v32 = vunpack.c.l.bf16 %v898_v30  ;;  %v959_v37 = vmul.bf16 %v957_v4, %v3289_v6 }
 0x252   : > { %v971_v15 = vunpack.c.l.bf16 %v969_v11  ;;  %v841_v27 = vsel %vm779_vm0, %v839_v25, 0.0  ;;  %v844_v31 = vsel %vm779_vm0, %v840_v29, 0.0  ;;  %v901_v35 = vunpack.c.l.bf16 %v899_v33 }
 0x253   : > { %v972_v21 = vunpack.c.l.bf16 %v970_v16  ;;  %v902_v34 = vsel %vm779_vm0, %v900_v32, 0.0  ;;  %v961_v38 = vunpack.c.l.bf16 %v959_v37  ;;  %v960_v40 = vmul.bf16 %v958_v12, %v950_v13 }
 0x254   : > { %852 = vadd.xlane.f32.xlu1 %v851_v56  ;;  %v973_v20 = vsel %vm779_vm0, %v971_v15, 0.0  ;;  %v905_v36 = vsel %vm779_vm0, %v901_v35, 0.0  ;;  %v859_v42 = vsel %vm857_vm5, 65537, %v2312_v0  ;;  %v860_v43 = vsel %vm858_vm6, 65537, %v2312_v0 }
 0x255   : > { %v976_v24 = vsel %vm779_vm0, %v972_v21, 0.0  ;;  %v963_v39 = vsel %vm779_vm0, %v961_v38, 0.0  ;;  %v962_v44 = vunpack.c.l.bf16 %v960_v40  ;;  %v861_v45 = vunpack.c.l.b16 %v859_v42 }
 0x256   : > { %v862_v46 = vunpack.c.l.b16 %v860_v43  ;;  %v920_v47 = vsel %vm918_vm7, 65537, %v2312_v0  ;;  %v921_v28 = vsel %vm919_vm8, 65537, %v2312_v0  ;;  %v981_v50 = vsel %vm979_vm9, 65537, %v2312_v0 }
 0x257   : > { %v966_v41 = vsel %vm779_vm0, %v962_v44, 0.0  ;;  %vm863_vm11 = vcmp.ne.s32.totalorder %v861_v45, 0  ;;  %v922_v48 = vunpack.c.l.b16 %v920_v47  ;;  %v923_v49 = vunpack.c.l.b16 %v921_v28 }
 0x258   : > { %855 = vadd.xlane.f32.xlu1 %v854_v2  ;;  %vm864_vm12 = vcmp.ne.s32.totalorder %v862_v46, 0  ;;  %v982_v51 = vsel %vm980_vm10, 65537, %v2312_v0  ;;  %v1402_v52 = vsel %vm863_vm11, 1.0, %v2313_v17  ;;  %v983_v54 = vunpack.c.l.b16 %v981_v50 }
 0x259   : > { %v1403_v53 = vsel %vm864_vm12, 1.0, %v2313_v17  ;;  %vm924_vm13 = vcmp.ne.s32.totalorder %v922_v48, 0  ;;  %vm925_vm14 = vcmp.ne.s32.totalorder %v923_v49, 0  ;;  %v984_v55 = vunpack.c.l.b16 %v982_v51 }
 0x25a   : > { %v1723_v56 = vpack.i.bf16 %v1403_v53, %v1402_v52  ;;  %v1404_v57 = vsel %vm924_vm13, 1.0, %v2313_v17  ;;  %v1405_v58 = vsel %vm925_vm14, 1.0, %v2313_v17  ;;  %vm985_vm15 = vcmp.ne.s32.totalorder %v983_v54, 0 }
 0x25b   : > { %vm986_vm0 = vcmp.ne.s32.totalorder %v984_v55, 0  ;;  %v1728_v59 = vpack.i.bf16 %v1405_v58, %v1404_v57  ;;  %v1406_v0 = vsel %vm985_vm15, 1.0, %v2313_v17  ;;  %v2314_v62 = vmov 2  }
 0x25c   : > { %913 = vadd.xlane.f32.xlu1 %v912_v9  ;;  %v1407_v60 = vsel %vm986_vm0, 1.0, %v2313_v17  ;;  %v3331_v9 = vand.u32 127, %v761_v7  ;;  %vm1022_vm5 = vcmask 31744  }
 0x25d   : > { %v1733_v61 = vpack.i.bf16 %v1407_v60, %v1406_v0 }
 0x25e   : > { %vm808_vm1 = vcmp.eq.s32.totalorder %v3331_v9, 0  ;;  %vm869_vm2 = vcmp.eq.s32.totalorder %v3331_v9, 1  ;;  %vm930_vm3 = vcmp.eq.s32.totalorder %v3331_v9, 2  ;;  %vm991_vm4 = vcmp.eq.s32.totalorder %v3331_v9, 3 }
 0x260   : > { %916 = vadd.xlane.f32.xlu1 %v915_v14 }
 0x264   : > { %974 = vadd.xlane.f32.xlu1 %v973_v20 }
 0x266   : > { %1718 = vperm.xlu0 %1716, %v1717_v23  }
 0x268   : > { %977 = vadd.xlane.f32.xlu1 %v976_v24 }
 0x26a   : > { %1739 = vset.pattern.permute.xlu0 %v2314_v62 }
 0x26c   : > { %842 = vadd.xlane.f32.xlu1 %v841_v27 }
 0x270   : > { %845 = vadd.xlane.f32.xlu1 %v844_v31 }
 0x274   : > { %903 = vadd.xlane.f32.xlu1 %v902_v34 }
 0x278   : > { %906 = vadd.xlane.f32.xlu1 %v905_v36 }
 0x27c   : > { %964 = vadd.xlane.f32.xlu1 %v963_v39 }
 0x285   : > { %967 = vadd.xlane.f32.xlu0 %v966_v41 }
 0x28d   : > { %1724 = vperm.xlu1 %1722, %v1723_v56  }
 0x291   : > { %1729 = vperm.xlu1 %1722, %v1728_v59  }
 0x295   : > { %1734 = vperm.xlu1 %1722, %v1733_v61  }
 0x2d9   : > { %v792_v63 = vpop.xlane.xlu1 %791  ;;  %v782_v19 = vpop.xlane.xlu0 %781 }
 0x2da   : > { %v811_v12 = vsel %vm808_vm1, %v792_v63, 0.0  ;;  %v809_v27 = vsel %vm808_vm1, %v782_v19, 0.0 }
 0x2dd   : > { %v795_v1 = vpop.xlane.xlu1 %794  ;;  %v785_v25 = vpop.xlane.xlu0 %784 }
 0x2de   : > { %v812_v14 = vsel %vm808_vm1, %v795_v1, 0.0  ;;  %v810_v34 = vsel %vm808_vm1, %v785_v25, 0.0  ;;  %v1044_v25 = vshrl.u32 %v761_v7, 7 }
 0x2e0   : > { %vm1045_vm8 = vcmp.eq.s32.totalorder %v1044_v25, 0  ;;  %vm1052_vm9 = vcmp.eq.s32.totalorder %v1044_v25, 1  ;;  %vm1058_vm10 = vcmp.eq.s32.totalorder %v1044_v25, 2  ;;  %vm1064_vm11 = vcmp.eq.s32.totalorder %v1044_v25, 3 }
 0x2e1   : > { %v853_v2 = vpop.xlane.xlu1 %852 }
 0x2e2   : > { %v872_v13 = vsel %vm869_vm2, %v853_v2, %v811_v12 }
 0x2e5   : > { %v856_v3 = vpop.xlane.xlu1 %855  ;;  %v1719_v31 = vpop.permute.xlu0 %1718 }
 0x2e6   : > { %v873_v17 = vsel %vm869_vm2, %v856_v3, %v812_v14  ;;  %v1720_v35 = vunpack.i.l.bf16 %v1719_v31  ;;  %v1721_v36 = vunpack.i.h.bf16 %v1719_v31 }
 0x2e8   : > { %v823_v41 = vsel %vm808_vm1, %v1720_v35, 0.0  ;;  %v824_v51 = vsel %vm808_vm1, %v1721_v36, 0.0 }
 0x2e9   : > { %v914_v4 = vpop.xlane.xlu1 %913 }
 0x2ea   : > { %v933_v15 = vsel %vm930_vm3, %v914_v4, %v872_v13 }
 0x2ed   : > { %v917_v5 = vpop.xlane.xlu1 %916 }
 0x2ee   : > { %v934_v20 = vsel %vm930_vm3, %v917_v5, %v873_v17 }
 0x2f1   : > { %v975_v6 = vpop.xlane.xlu1 %974 }
 0x2f2   : > { %v994_v18 = vsel %vm991_vm4, %v975_v6, %v933_v15 }
 0x2f3   : > { %v1010_v22 = vadd.f32 1.0, %v994_v18 }
 0x2f5   : > { %v978_v8 = vpop.xlane.xlu1 %977  ;;  %1758 = vrcp.f32 %v1010_v22 }
 0x2f6   : > { %v995_v21 = vsel %vm991_vm4, %v978_v8, %v934_v20 }
 0x2f7   : > { %v1011_v24 = vadd.f32 1.0, %v995_v21 }
 0x2f9   : > { %v843_v10 = vpop.xlane.xlu1 %842  ;;  %1760 = vrcp.f32 %v1011_v24  ;;  %v2316_v24 = vmov 3  }
 0x2fa   : > { %v870_v29 = vsel %vm869_vm2, %v843_v10, %v809_v27 }
 0x2fd   : > { %v846_v11 = vpop.xlane.xlu1 %845 }
 0x2fe   : > { %v871_v38 = vsel %vm869_vm2, %v846_v11, %v810_v34 }
 0x2ff   : > { %v1759_v45 = vpop.eup %1758 }
 0x301   : > { %v904_v16 = vpop.xlane.xlu1 %903 }
 0x302   : > { %v931_v30 = vsel %vm930_vm3, %v904_v16, %v870_v29 }
 0x303   : > { %v1761_v50 = vpop.eup %1760 }
 0x305   : > { %v907_v23 = vpop.xlane.xlu1 %906 }
 0x306   : > { %v932_v42 = vsel %vm930_vm3, %v907_v23, %v871_v38  ;;  %v2315_v23 = vmov 1  }
 0x309   : > { %v965_v26 = vpop.xlane.xlu1 %964 }
 0x30a   : > { %v992_v32 = vsel %vm991_vm4, %v965_v26, %v931_v30 }
 0x30b   : > { %v1008_v37 = vmul.f32 2.0, %v992_v32 }
 0x30d   : > { %v1725_v33 = vpop.permute.xlu1 %1724  ;;  %v1013_v48 = vmul.f32 %v1759_v45, %v1008_v37 }
 0x30e   : > { %v1726_v39 = vunpack.i.l.bf16 %v1725_v33  ;;  %v1727_v43 = vunpack.i.h.bf16 %v1725_v33 }
 0x30f   : > { %v1016_v0 = vsub.f32 1.0, %v1013_v48 }
 0x310   : > { %v884_v52 = vsel %vm869_vm2, %v1726_v39, %v823_v41  ;;  %v885_v54 = vsel %vm869_vm2, %v1727_v43, %v824_v51 }
 0x311   : > { %v1730_v40 = vpop.permute.xlu1 %1729 }
 0x312   : > { %v968_v44 = vpop.xlane.xlu0 %967  ;;  %v1732_v46 = vunpack.i.h.bf16 %v1730_v40  ;;  %v1731_v47 = vunpack.i.l.bf16 %v1730_v40 }
 0x313   : > { %v993_v28 = vsel %vm991_vm4, %v968_v44, %v932_v42 }
 0x314   : > { %v1009_v49 = vmul.f32 2.0, %v993_v28  ;;  %v945_v58 = vsel %vm930_vm3, %v1731_v47, %v884_v52  ;;  %v946_v59 = vsel %vm930_vm3, %v1732_v46, %v885_v54 }
 0x315   : > { %v1735_v53 = vpop.permute.xlu1 %1734 }
 0x316   : > { %v1015_v55 = vmul.f32 %v1761_v50, %v1009_v49  ;;  %v1737_v56 = vunpack.i.h.bf16 %v1735_v53  ;;  %v1736_v57 = vunpack.i.l.bf16 %v1735_v53 }
 0x318   : > { %v1017_v60 = vsub.f32 1.0, %v1015_v55  ;;  %v1006_v61 = vsel %vm991_vm4, %v1736_v57, %v945_v58  ;;  %v1007_v62 = vsel %vm991_vm4, %v1737_v56, %v946_v59 }
 0x319   : > { %vm1018_vm6 = vcmp.ne.f32.partialorder %v1006_v61, 0.0  ;;  %vm1019_vm7 = vcmp.ne.f32.partialorder %v1007_v62, 0.0  ;;  %v1032_v63 = vsel %vm1022_vm5, %v1006_v61, 0.0  ;;  %v1033_v1 = vsel %vm1022_vm5, %v1007_v62, 0.0 }
 0x31a   : > { %v1020_v2 = vsel %vm1018_vm6, %v1016_v0, 0.0  ;;  %v1021_v3 = vsel %vm1019_vm7, %v1017_v60, 0.0  ;;  %v1034_v4 = vadd.f32 %v1033_v1, %v1032_v63 }
 0x31b   : > { %v1023_v5 = vsel %vm1022_vm5, %v1020_v2, 0.0  ;;  %v1024_v6 = vsel %vm1022_vm5, %v1021_v3, 0.0 }
 0x31c   : > { %v1025_v8 = vadd.f32 %v1024_v6, %v1023_v5  ;;  %v1035_v10 = vrot.slane %v1034_v4, 4 }
 0x31e   : > { %v1026_v11 = vrot.slane %v1025_v8, 4  ;;  %v1036_v12 = vadd.f32 %v1035_v10, %v1034_v4 }
 0x320   : > { %v1037_v13 = vrot.slane %v1036_v12, 2  ;;  %v1027_v9 = vadd.f32 %v1026_v11, %v1025_v8 }
 0x322   : > { %v1038_v14 = vadd.f32 %v1037_v13, %v1036_v12  ;;  %v1028_v16 = vrot.slane %v1027_v9, 2 }
 0x324   : > { %v1039_v15 = vrot.slane %v1038_v14, 1  ;;  %v1029_v18 = vadd.f32 %v1028_v16, %v1027_v9 }
 0x326   : > { %v1040_v17 = vadd.f32 %v1039_v15, %v1038_v14  ;;  %v1030_v19 = vrot.slane %v1029_v18, 1 }
 0x328   : > { %1762 = vrcp.f32 %v1040_v17  ;;  %v1031_v20 = vadd.f32 %v1030_v19, %v1029_v18 }
 0x332   : > { %v1763_v21 = vpop.eup %1762 }
 0x333   : > { %v1042_v22 = vmul.f32 %v1763_v21, %v1031_v20 }
 0x335   : > { %1060 = vperm.xlu0 %1739, %v1042_v22   ;;  %1048 = vperm.xlu1 %1722, %v1042_v22  }
 0x339   : > { %1738 = vset.pattern.permute.xlu1 %v2315_v23  ;;  %1741 = vset.pattern.permute.xlu0 %v2316_v24 }
 0x33a   : > { %1054 = vperm.xlu1 %1738, %v1042_v22  }
 0x33e   : > { %1740 = vset.pattern.permute.xlu1 %v2316_v24 }
 0x33f   : > { %1066 = vperm.xlu1 %1740, %v1042_v22  }
 0x3b4   : > { %v1049_v26 = vpop.permute.xlu1 %1048  ;;  %v1061_v31 = vpop.permute.xlu0 %1060 }
 0x3b5   : > { %v1051_v29 = vsel %vm1045_vm8, %v1049_v26, 0.0 }
 0x3b9   : > { %v1055_v27 = vpop.permute.xlu1 %1054 }
 0x3ba   : > { %v1057_v30 = vsel %vm1052_vm9, %v1055_v27, %v1051_v29 }
 0x3bb   : > { %v1063_v32 = vsel %vm1058_vm10, %v1061_v31, %v1057_v30 }
 0x3be   : > { %v1067_v33 = vpop.permute.xlu1 %1066 }
 0x3bf   : > { %v1069_v7 = vsel %vm1064_vm11, %v1067_v33, %v1063_v32 }
 0x3c0   : > { %1070 = vst [vmem:[%s726_s16] sm:$0xff] %v1069_v7 }
 0x3c1   : > { %2023 = shalt.err (!%p2020_p12)
}
 0x3c2   : > { %s2024_s23 = scalar_lea.hbm %s3395_s11, 128  ;;  %s2028_s6 = scalar_lea.hbm %s3812_s10, 256 }
 0x3c3   : > { %p2025_p0 = scmp.ne.s32.totalorder %s3395_s11, %s2024_s23  ;;  %p2029_p13 = scmp.lt.u32.totalorder %s3395_s11, %s3812_s10 }
 0x3c4   : > { %p2030_p1 = scmp.lt.u32.totalorder %s2028_s6, %s2024_s23  ;;  %p2032_p10 = scmp.lt.u32.totalorder %s2024_s23, %s3395_s11 }
 0x3c5   : > { %p2026_p11 = pnand %p2025_p0, %p3813_p7 }
 0x3c6   : > { %p2031_p8 = por %p2030_p1, %p2029_p13 }
 0x3c7   : > { %p2027_p6 = pneg %p2026_p11 }
 0x3c8   : > { %p2033_p5 = por %p2032_p10, %p2031_p8 }
 0x3ca   : > { %p2034_p9 = pnand %p2033_p5, %p2027_p6 }
 0x3cc   : > { %2037 = shalt.err (!%p2034_p9)
}
 0x3cd   : > { %1476 = dma.vmem_to_hbm [thread:$0]  (%p3813_p7), %s3397_s18, 128, %s3395_s11, %s1072_s17  }
 0x3ce PF: > { %s3814_s13 = sld [smem:[#allocation46_spill]]  ;;  %s3815_s30 = sld [smem:[#allocation93_spill]] }
 0x3cf   : > { %s3816_s14 = sld [smem:[#allocation69_spill]] }
 0x3d4   : > { %s1097_s24 = sand.u32 1, %s3814_s13   ;;  %p3817_p3 = scmp.ne.s32.totalorder %s3815_s30, 0 }
 0x3d5   : > { %p3818_p2 = scmp.ge.s32.totalorder %s3816_s14, 2  ;;  %s1098_s22 = scalar_lea.sflag [#allocation7], %s1097_s24 }
 0x3d7   : > { %p1479_p4 = pnand %p3818_p2, %p3817_p3 }
 0x3d9   : > { %2185 = dma.done.wait (!%p1479_p4), %s1098_s22, 128  }
 0x3da   : > { %2187 = vsyncadd (!%p1479_p4), %s1098_s22, 4294967168  ;;  %s3819_s2 = sld [smem:[#allocation71_spill]]  ;;  %s3820_s0 = sld [smem:[#allocation47_spill]] }
 0x3db   : > { %s3821_s29 = sld [smem:[#allocation50_spill]]  ;;  %s3822_s28 = sld [smem:[#allocation90_spill]] }
 0x3dc   : > { %s3823_s16 = sld [smem:[#allocation52_spill]]  ;;  %s3824_s30 = sld [smem:[#allocation53_spill]] }
 0x3dd   : > { %s3825_s11 = sld [smem:[#allocation91_spill]]  ;;  %s3826_s12 = sld [smem:[#allocation48_spill]] }
 0x3de   : > { %s3827_s13 = sld [smem:[#allocation49_spill]]  ;;  %s3828_s14 = sld [smem:[#allocation88_spill]] }
 0x3df   : > { %s3829_s8 = sld [smem:[#allocation56_spill]]  ;;  %s3830_s18 = sld [smem:[#allocation57_spill]] }
 0x3e0   : > { %s3831_s17 = sld [smem:[#allocation87_spill]]  ;;  %s3833_s19 = sld [smem:[#allocation60_spill]] }
 0x3e1   : > { %s3832_s20 = sld [smem:[#allocation59_spill]]  ;;  %s3834_s7 = sld [smem:[#allocation86_spill]] }
 0x3e2   : > { %p43_p7 = scmp.ge.s32.totalorder %s3819_s2, 4   ;;  %s3835_s21 = sld [smem:[#allocation61_spill]] }
 0x3e3   : > { %s3836_s22 = sld [smem:[#allocation62_spill]]  ;;  %3837 = sst [smem:[#allocation46_spill]] %s3821_s29 }
 0x3e4   : > { %s3838_s23 = sld [smem:[#allocation84_spill]]  ;;  %s3839_s24 = sld [smem:[#allocation63_spill]] }
 0x3e5   : > { %s3840_s29 = smov %s3823_s16  ;;  %s3841_s25 = sld [smem:[#allocation64_spill]] }
 0x3e6   : > { %s3842_s26 = sld [smem:[#allocation82_spill]]  ;;  %s3843_s27 = sld [smem:[#allocation65_spill]] }
 0x3e7   : > { %s3844_s4 = sld [smem:[#allocation66_spill]]  ;;  %s3845_s6 = sld [smem:[#allocation78_spill]] }
 0x3e8   : > { %s3846_s1 = sld [smem:[#allocation67_spill]]  ;;  %s3848_s3 = sld [smem:[#allocation68_spill]] }
 0x3e9   : > { %3847 = sst [smem:[#allocation47_spill]] %s3829_s8  ;;  %s3849_s16 = smov %s3830_s18 }
 0x3ea   : > { %s3850_s5 = sld [smem:[#allocation74_spill]]  ;;  %s3851_s18 = smov %s3832_s20 }
 0x3eb   : > { %s3853_s20 = smov %s3834_s7  ;;  %45 = sbr.rel (!%p43_p7) target bundleno = 53 (0x35), region = 182 }
 0x3ed   : > { %3854 = sst [smem:[#allocation48_spill]] %s3844_s4 }
 0x3ee   : > { %3855 = sst [smem:[#allocation49_spill]] %s3845_s6  ;;  %s3856_s8 = smov %s3846_s1 }
 0x3ef   : > { %s3857_s6 = smov %s3848_s3 }
 0x3f0   : > { %s3858_s4 = smov %s3850_s5 }
 0x3f2   :  { %1103 = vsyncpa [#allocation6], 1 }
 0x3f3   :  { %1105 = vsyncpa [#allocation6 + $0x1], 1 }
 0x3f4   :  { %1106 = vsyncpa [#allocation9], 1 }
 0x3f5   :  { %1108 = vsyncpa [#allocation9 + $0x1], 1 }
 0x3f6   :  { %1109 = vsyncpa [#allocation12], 1 }
 0x3f7   :  { %1111 = vsyncpa [#allocation12 + $0x1], 1 }
 0x3f8   :  { %1112 = vsyncpa [#allocation15], 1 }
 0x3f9   :  { %1114 = vsyncpa [#allocation15 + $0x1], 1 }
 0x3fa   :  { %1115 = vsyncpa [#allocation18], 1 }
 0x3fb   :  { %1117 = vsyncpa [#allocation18 + $0x1], 1 }
 0x3fc   :  { %1118 = vsyncpa [#allocation7], 1 }
 0x3fd   :  { %1120 = vsyncpa [#allocation7 + $0x1], 1 }

</bundles_post_ra>
